<compile_context>
chip_gen: v5e
topology: v5e:2x2
jax: 0.10.0
libtpu: 0.0.40
codegen_flags: <defaults>
</compile_context>

<pallas_src>
import jax
import jax.numpy as jnp
from jax import lax
from jax.experimental import pallas as pl
from jax.experimental.pallas import tpu as pltpu


def _round_up(x, m):
    return (x + m - 1) // m * m


def _make_kernel(b_tile, seq, v_pad, hidden):
    two_s = 2 * seq    # [token ids | segment ids] concatenated along the seq axis

    def kernel(ids_ref, vlen_ref, table_ref, wp_ref, bp_ref, wc_ref, bc_ref,
               out_ref):
        # ---- gen_attention_mask: prefix mask from valid_length (fused) ----
        pos = lax.broadcasted_iota(jnp.int32, (b_tile, two_s), 1)
        pos = jnp.where(pos >= seq, pos - seq, pos)        # both halves share positions
        vlen = vlen_ref[...]                               # [b_tile, 1] int32
        mask = (pos < vlen).astype(jnp.float32)            # [b_tile, 2S]

        # ---- embedding gather: masked one-hot counts + one MXU matmul ----
        ids = ids_ref[...]                                 # [b_tile, 2S] int32
        vrow = lax.broadcasted_iota(jnp.int32, (b_tile, v_pad, two_s), 1)
        hit = ids[:, None, :] == vrow                      # [b_tile, V_pad, 2S]
        weighted = jnp.where(hit, mask[:, None, :], 0.0)   # mask folds padding + prefix
        counts = jnp.sum(weighted, axis=-1)                # [b_tile, V_pad] lane reduce
        sum_emb = jnp.dot(counts.astype(jnp.bfloat16), table_ref[...],
                          preferred_element_type=jnp.float32)   # [b_tile, H]

        # ---- surrogate pooler: masked mean over valid tokens + tanh dense ----
        denom = jnp.maximum(vlen.astype(jnp.float32), 1.0)  # [b_tile, 1]
        pooled_in = sum_emb / denom
        pooled = jnp.tanh(
            jnp.dot(pooled_in, wp_ref[...], preferred_element_type=jnp.float32)
            + bp_ref[...])

        # dropout: eval mode => identity
        out_ref[...] = (
            jnp.dot(pooled, wc_ref[...], preferred_element_type=jnp.float32)
            + bc_ref[...])

    return kernel


def bert_classifier_forward(token_ids, valid_length, segment_ids, params,
                            *, b_tile=8):
    """Fused mask-gen + embedding gather + masked pooling + pooler + classifier."""
    tok_emb = params["tok_emb"].astype(jnp.float32)
    seg_emb = params["seg_emb"].astype(jnp.float32)
    vocab, H = tok_emb.shape
    nseg = seg_emb.shape[0]
    C = params["w_cls"].shape[1]

    B, S = token_ids.shape
    B_pad = _round_up(B, b_tile)                 # sublane-aligned batch
    C_pad = _round_up(C, 128)                    # lane-dense output (no masked stores)
    V_pad = _round_up(vocab + nseg, 128)         # MXU-aligned gather contraction

    # Combined ids: segment ids are offset by vocab so a single table serves both.
    ids_comb = jnp.concatenate(
        [token_ids.astype(jnp.int32), segment_ids.astype(jnp.int32) + vocab], axis=1)
    ids_comb = jnp.pad(ids_comb, ((0, B_pad - B), (0, 0)))          # [B_pad, 2S]
    vlen = jnp.pad(valid_length.astype(jnp.int32), (0, B_pad - B)).reshape(B_pad, 1)

    # Combined embedding table [V_pad, H], streamed as bf16.
    table = jnp.concatenate([tok_emb, seg_emb], axis=0)
    table = jnp.pad(table, ((0, V_pad - table.shape[0]), (0, 0))).astype(jnp.bfloat16)

    wp = params["w_pool"].astype(jnp.float32)                        # [H, H]
    bp = params["b_pool"].astype(jnp.float32).reshape(1, H)
    wc = jnp.pad(params["w_cls"].astype(jnp.float32), ((0, 0), (0, C_pad - C)))
    bc = jnp.pad(params["b_cls"].astype(jnp.float32).reshape(1, C),
                 ((0, 0), (0, C_pad - C)))

    nbt = B_pad // b_tile
    two_s = 2 * S
    kernel = _make_kernel(b_tile, S, V_pad, H)

    grid_spec = pltpu.PrefetchScalarGridSpec(
        num_scalar_prefetch=0,
        grid=(nbt,),
        in_specs=[
            pl.BlockSpec((b_tile, two_s), lambda i: (i, 0)),   # combined ids
            pl.BlockSpec((b_tile, 1), lambda i: (i, 0)),       # valid_length column
            pl.BlockSpec((V_pad, H), lambda i: (0, 0)),        # combined emb table (bf16)
            pl.BlockSpec((H, H), lambda i: (0, 0)),            # pooler weight
            pl.BlockSpec((1, H), lambda i: (0, 0)),            # pooler bias
            pl.BlockSpec((H, C_pad), lambda i: (0, 0)),        # classifier weight (padded)
            pl.BlockSpec((1, C_pad), lambda i: (0, 0)),        # classifier bias (padded)
        ],
        out_specs=pl.BlockSpec((b_tile, C_pad), lambda i: (i, 0)),
    )

    flops = (2 * B_pad * two_s * V_pad          # one-hot / mask (VPU)
             + 2 * B_pad * V_pad * H            # gather matmul (MXU)
             + 2 * B_pad * H * H                # pooler dense
             + 2 * B_pad * H * C_pad)           # classifier
    bytes_accessed = (ids_comb.size * 4 + vlen.size * 4
                      + table.size * 2
                      + (H * H + H + H * C_pad + C_pad) * 4
                      + B_pad * C_pad * 4)
    cost = pl.CostEstimate(flops=flops, transcendentals=B_pad * H,
                           bytes_accessed=bytes_accessed)

    out_pad = pl.pallas_call(
        kernel,
        out_shape=jax.ShapeDtypeStruct((B_pad, C_pad), jnp.float32),
        grid_spec=grid_spec,
        compiler_params=pltpu.CompilerParams(
            dimension_semantics=("parallel",),     # batch tiles shard across TCs on v7x
            vmem_limit_bytes=32 * 1024 * 1024),
        cost_estimate=cost,
    )(ids_comb, vlen, table, wp, bp, wc, bc)

    return out_pad[:B, :C]


def reference_forward(token_ids, valid_length, segment_ids, params):
    # Same bf16 rounding of the embedding tables as the kernel; all other math f32.
    tok = params["tok_emb"].astype(jnp.bfloat16).astype(jnp.float32)
    seg = params["seg_emb"].astype(jnp.bfloat16).astype(jnp.float32)
    emb = tok[token_ids] + seg[segment_ids]
    S = emb.shape[1]
    mask = (jnp.arange(S)[None, :] < valid_length[:, None]).astype(jnp.float32)
    summed = jnp.sum(emb * mask[:, :, None], axis=1)
    denom = jnp.maximum(valid_length.astype(jnp.float32), 1.0)[:, None]
    pooled = jnp.tanh((summed / denom) @ params["w_pool"] + params["b_pool"])
    return pooled @ params["w_cls"] + params["b_cls"]


if __name__ == "__main__":
    # Small shapes consistent with the module's forward signature.
    B, S, H, C = 10, 24, 32, 15      # batch, seq, hidden_size, num_classes
    VOCAB, NSEG = 100, 2

    key = jax.random.PRNGKey(0)
    k_tok, k_seg, k_wp, k_wc, k_ids, k_segids = jax.random.split(key, 6)

    params = {
        "tok_emb": 0.02 * jax.random.normal(k_tok, (VOCAB, H), jnp.float32),
        "seg_emb": 0.02 * jax.random.normal(k_seg, (NSEG, H), jnp.float32),
        "w_pool": 0.1 * jax.random.normal(k_wp, (H, H), jnp.float32),
        "b_pool": 0.01 * jnp.ones((1, H), jnp.float32),
        "w_cls": 0.1 * jax.random.normal(k_wc, (H, C), jnp.float32),
        "b_cls": 0.01 * jnp.ones((1, C), jnp.float32),
    }

    token_ids = jax.random.randint(k_ids, (B, S), 0, VOCAB, dtype=jnp.int32)
    segment_ids = jax.random.randint(k_segids, (B, S), 0, NSEG, dtype=jnp.int32)
    # Prefix valid lengths (gen_attention_mask semantics).
    valid_length = jnp.array([5, 24, 17, 3, 9, 24, 1, 12, 7, 2], dtype=jnp.int32)

    logits = bert_classifier_forward(token_ids, valid_length, segment_ids, params)
    logits = jax.block_until_ready(logits)

    ref = reference_forward(token_ids, valid_length, segment_ids, params)
    assert logits.shape == (B, C)
    assert jnp.allclose(logits, ref, atol=2e-4, rtol=1e-3), (
        f"mismatch vs JAX reference, max abs diff = {jnp.max(jnp.abs(logits - ref))}")

    print("KERNEL_OK")
</pallas_src>

<mosaic_0001>
module attributes {stable_mosaic.version = 11 : i64} {
  func.func @kernel(%arg0: i32, %arg1: memref<8x48xi32, #tpu.memory_space<vmem>>, %arg2: memref<8x1xi32, #tpu.memory_space<vmem>>, %arg3: memref<128x32xbf16, #tpu.memory_space<vmem>>, %arg4: memref<32x32xf32, #tpu.memory_space<vmem>>, %arg5: memref<1x32xf32, #tpu.memory_space<vmem>>, %arg6: memref<32x128xf32, #tpu.memory_space<vmem>>, %arg7: memref<1x128xf32, #tpu.memory_space<vmem>>, %arg8: memref<8x128xf32, #tpu.memory_space<vmem>>) attributes {dimension_semantics = [#tpu.dimension_semantics<parallel>], iteration_bounds = array<i64: 2>, scalar_prefetch = 0 : i64, scratch_operands = 0 : i64, tpu.core_type = #tpu.core_type<tc>, window_params = [{transform_indices = @transform_0, window_bounds = array<i64: 8, 48>}, {transform_indices = @transform_1, window_bounds = array<i64: 8, 1>}, {pipeline_mode = #tpu.pipeline_mode<synchronous>, transform_indices = @transform_2, window_bounds = array<i64: 128, 32>}, {pipeline_mode = #tpu.pipeline_mode<synchronous>, transform_indices = @transform_3, window_bounds = array<i64: 32, 32>}, {pipeline_mode = #tpu.pipeline_mode<synchronous>, transform_indices = @transform_4, window_bounds = array<i64: 1, 32>}, {pipeline_mode = #tpu.pipeline_mode<synchronous>, transform_indices = @transform_5, window_bounds = array<i64: 32, 128>}, {pipeline_mode = #tpu.pipeline_mode<synchronous>, transform_indices = @transform_6, window_bounds = array<i64: 1, 128>}, {transform_indices = @transform_7, window_bounds = array<i64: 8, 128>}]} {
    %0 = tpu.iota {dimensions = array<i32: 1>} : vector<8x48xi32>
    %c24_i32 = arith.constant 24 : i32
    %1 = vector.broadcast %c24_i32 : i32 to vector<8x48xi32>
    %2 = arith.cmpi sge, %0, %1 : vector<8x48xi32>
    %c24_i32_0 = arith.constant 24 : i32
    %3 = vector.broadcast %c24_i32_0 : i32 to vector<8x48xi32>
    %4 = arith.subi %0, %3 : vector<8x48xi32>
    %5 = arith.select %2, %4, %0 : vector<8x48xi1>, vector<8x48xi32>
    %c0 = arith.constant 0 : index
    %c0_1 = arith.constant 0 : index
    %6 = vector.load %arg2[%c0, %c0_1] : memref<8x1xi32, #tpu.memory_space<vmem>>, vector<8x1xi32>
    %7 = vector.broadcast %6 : vector<8x1xi32> to vector<8x48xi32>
    %8 = arith.cmpi slt, %5, %7 : vector<8x48xi32>
    %9 = arith.extui %8 : vector<8x48xi1> to vector<8x48xi32>
    %10 = arith.sitofp %9 : vector<8x48xi32> to vector<8x48xf32>
    %c0_2 = arith.constant 0 : index
    %c0_3 = arith.constant 0 : index
    %11 = vector.load %arg1[%c0_2, %c0_3] : memref<8x48xi32, #tpu.memory_space<vmem>>, vector<8x48xi32>
    %12 = tpu.iota {dimensions = array<i32: 1>} : vector<8x128x48xi32>
    %13 = vector.shape_cast %11 : vector<8x48xi32> to vector<8x1x48xi32>
    %14 = vector.broadcast %13 : vector<8x1x48xi32> to vector<8x128x48xi32>
    %15 = arith.cmpi eq, %14, %12 : vector<8x128x48xi32>
    %16 = vector.shape_cast %10 : vector<8x48xf32> to vector<8x1x48xf32>
    %cst = arith.constant 0.000000e+00 : f32
    %17 = vector.shape_cast %16 : vector<8x1x48xf32> to vector<8x1x48xf32>
    %18 = vector.broadcast %17 : vector<8x1x48xf32> to vector<8x128x48xf32>
    %19 = vector.broadcast %cst : f32 to vector<8x128x48xf32>
    %20 = arith.select %15, %18, %19 : vector<8x128x48xi1>, vector<8x128x48xf32>
    %cst_4 = arith.constant dense<0.000000e+00> : vector<8x128xf32>
    %21 = vector.multi_reduction <add>, %20, %cst_4 [2] : vector<8x128x48xf32> to vector<8x128xf32>
    %22 = arith.truncf %21 : vector<8x128xf32> to vector<8x128xbf16>
    %c0_5 = arith.constant 0 : index
    %c0_6 = arith.constant 0 : index
    %23 = vector.load %arg3[%c0_5, %c0_6] : memref<128x32xbf16, #tpu.memory_space<vmem>>, vector<128x32xbf16>
    %cst_7 = arith.constant dense<0.000000e+00> : vector<8x32xf32>
    %24 = tpu.matmul %22, %23, %cst_7 {dimension_numbers = #tpu.dot_dimension_numbers<[1], [0], [0], [1], [0, 0, 1, 1], [], []>} : vector<8x128xbf16>, vector<128x32xbf16>, vector<8x32xf32> -> vector<8x32xf32>
    %25 = arith.sitofp %6 : vector<8x1xi32> to vector<8x1xf32>
    %cst_8 = arith.constant 1.000000e+00 : f32
    %26 = vector.broadcast %cst_8 : f32 to vector<8x1xf32>
    %27 = arith.maximumf %25, %26 : vector<8x1xf32>
    %28 = vector.broadcast %27 : vector<8x1xf32> to vector<8x32xf32>
    %29 = arith.divf %24, %28 : vector<8x32xf32>
    %c0_9 = arith.constant 0 : index
    %c0_10 = arith.constant 0 : index
    %30 = vector.load %arg4[%c0_9, %c0_10] : memref<32x32xf32, #tpu.memory_space<vmem>>, vector<32x32xf32>
    %cst_11 = arith.constant dense<0.000000e+00> : vector<8x32xf32>
    %31 = tpu.matmul %29, %30, %cst_11 {dimension_numbers = #tpu.dot_dimension_numbers<[1], [0], [0], [1], [0, 0, 1, 1], [], []>} : vector<8x32xf32>, vector<32x32xf32>, vector<8x32xf32> -> vector<8x32xf32>
    %c0_12 = arith.constant 0 : index
    %c0_13 = arith.constant 0 : index
    %32 = vector.load %arg5[%c0_12, %c0_13] : memref<1x32xf32, #tpu.memory_space<vmem>>, vector<1x32xf32>
    %33 = vector.broadcast %32 : vector<1x32xf32> to vector<8x32xf32>
    %34 = arith.addf %31, %33 : vector<8x32xf32>
    %35 = math.tanh %34 : vector<8x32xf32>
    %c0_14 = arith.constant 0 : index
    %c0_15 = arith.constant 0 : index
    %36 = vector.load %arg6[%c0_14, %c0_15] : memref<32x128xf32, #tpu.memory_space<vmem>>, vector<32x128xf32>
    %cst_16 = arith.constant dense<0.000000e+00> : vector<8x128xf32>
    %37 = tpu.matmul %35, %36, %cst_16 {dimension_numbers = #tpu.dot_dimension_numbers<[1], [0], [0], [1], [0, 0, 1, 1], [], []>} : vector<8x32xf32>, vector<32x128xf32>, vector<8x128xf32> -> vector<8x128xf32>
    %c0_17 = arith.constant 0 : index
    %c0_18 = arith.constant 0 : index
    %38 = vector.load %arg7[%c0_17, %c0_18] : memref<1x128xf32, #tpu.memory_space<vmem>>, vector<1x128xf32>
    %39 = vector.broadcast %38 : vector<1x128xf32> to vector<8x128xf32>
    %40 = arith.addf %37, %39 : vector<8x128xf32>
    %c0_19 = arith.constant 0 : index
    %c0_20 = arith.constant 0 : index
    %41 = vector.load %arg8[%c0_19, %c0_20] : memref<8x128xf32, #tpu.memory_space<vmem>>, vector<8x128xf32>
    tpu.vector_store %arg8[%c0_19, %c0_20], %40 {strides = array<i32>} : memref<8x128xf32, #tpu.memory_space<vmem>>, vector<8x128xf32>,
    return
  }
  func.func @transform_0(%arg0: i32) -> (i32, i32) {
    %c0_i32 = arith.constant 0 : i32
    %c0_i32_0 = arith.constant 0 : i32
    return %arg0, %c0_i32 : i32, i32
  }
  func.func @transform_1(%arg0: i32) -> (i32, i32) {
    %c0_i32 = arith.constant 0 : i32
    %c0_i32_0 = arith.constant 0 : i32
    return %arg0, %c0_i32 : i32, i32
  }
  func.func @transform_2(%arg0: i32) -> (i32, i32) {
    %c0_i32 = arith.constant 0 : i32
    %c0_i32_0 = arith.constant 0 : i32
    %c0_i32_1 = arith.constant 0 : i32
    return %c0_i32, %c0_i32_0 : i32, i32
  }
  func.func @transform_3(%arg0: i32) -> (i32, i32) {
    %c0_i32 = arith.constant 0 : i32
    %c0_i32_0 = arith.constant 0 : i32
    %c0_i32_1 = arith.constant 0 : i32
    return %c0_i32, %c0_i32_0 : i32, i32
  }
  func.func @transform_4(%arg0: i32) -> (i32, i32) {
    %c0_i32 = arith.constant 0 : i32
    %c0_i32_0 = arith.constant 0 : i32
    %c0_i32_1 = arith.constant 0 : i32
    return %c0_i32, %c0_i32_0 : i32, i32
  }
  func.func @transform_5(%arg0: i32) -> (i32, i32) {
    %c0_i32 = arith.constant 0 : i32
    %c0_i32_0 = arith.constant 0 : i32
    %c0_i32_1 = arith.constant 0 : i32
    return %c0_i32, %c0_i32_0 : i32, i32
  }
  func.func @transform_6(%arg0: i32) -> (i32, i32) {
    %c0_i32 = arith.constant 0 : i32
    %c0_i32_0 = arith.constant 0 : i32
    %c0_i32_1 = arith.constant 0 : i32
    return %c0_i32, %c0_i32_0 : i32, i32
  }
  func.func @transform_7(%arg0: i32) -> (i32, i32) {
    %c0_i32 = arith.constant 0 : i32
    %c0_i32_0 = arith.constant 0 : i32
    return %arg0, %c0_i32 : i32, i32
  }
}

</mosaic_0001>

<bundles_post_ra>
// kernel: tpu_custom_call.1
= control target key start
LH: loop header
LB: loop body
LE: loop exit
PB: predicated region body
PF: predicated region fallthrough
CT: control target
= control target key end

     0   :  { %12 = vsyncpa [#allocation3], 0  ;;  %s3288_s0 = inlined_call_operand.vmem [shape: s32[16,48], index: 0, kind: input, shape index: {}]   ;;  %s3289_s1 = inlined_call_operand.vmem [shape: s32[16,1], index: 1, kind: input, shape index: {}]   ;;  %s3290_s2 = inlined_call_operand.vmem [shape: bf16[128,32], index: 2, kind: input, shape index: {}]   ;;  %s3291_s3 = inlined_call_operand.vmem [shape: f32[32,32], index: 3, kind: input, shape index: {}]   ;;  %s3292_s4 = inlined_call_operand.vmem [shape: f32[1,32], index: 4, kind: input, shape index: {}]   ;;  %s3293_s5 = inlined_call_operand.vmem [shape: f32[32,128], index: 5, kind: input, shape index: {}]   ;;  %s3294_s6 = inlined_call_operand.vmem [shape: f32[1,128], index: 6, kind: input, shape index: {}]   ;;  %s3295_s7 = inlined_call_operand.hbm [shape: f32[16,128], index: 7, kind: output, shape index: {}]  }
   0x1   :  { %14 = vsyncpa [#allocation3 + $0x1], 0  ;;  %s2013_s24 = smov 0   ;;  %s2015_s25 = smov 0  }
   0x2   :  { %s2017_s26 = smov 0   ;;  %s2019_s27 = smov 0  }
   0x3 LB: > { %s2034_s28 = sadd.s32 4294967295, %s1969_s27   ;;  %s1802_s29 = sadd.s32 4294967294, %s1969_s27   ;;  %s1969_s27 = sphi %s2019_s27, %s3303_s27   ;;  %s1965_s26 = sphi %s2017_s26, %s3302_s26   ;;  %s1961_s25 = sphi %s2015_s25, %s3301_s25   ;;  %s1957_s24 = sphi %s2013_s24, %s3300_s24  }
   0x4   : > { %s2038_s30 = sadd.s32 1, %s1969_s27   ;;  %s184_s8 = sadd.s32 1, %s1965_s26 }
   0x5   : > { %s181_s9 = ssub.s32 %s1969_s27, %s2038_s30  ;;  %p194_p0 = scmp.ne.s32.totalorder %s1965_s26, %s1961_s25 }
   0x6   : > { %p182_p1 = scmp.eq.s32.totalorder %s181_s9, 0  ;;  %p195_p2 = scmp.eq.s32.totalorder %s2034_s28, 1 }
   0x7   : > { %p200_p3 = scmp.ne.s32.totalorder %s1961_s25, %s1957_s24  ;;  %p201_p4 = scmp.eq.s32.totalorder %s1802_s29, 1 }
   0x8   : > { %s2049_s10 = scalar_select %p182_p1, %s1965_s26, %s184_s8  }
   0x9   : > { %p2051_p5 = por %p195_p2, %p194_p0  ;;  %p2055_p6 = por %p201_p4, %p200_p3 }
   0xa   : > { %p1805_p7 = scmp.ge.s32.totalorder %s1969_s27, 1  ;;  %p248_p8 = scmp.lt.s32.totalorder %s1969_s27, 3 }
   0xc   : > { %p249_p9 = pnand %p1805_p7, %p248_p8 }
   0xe   : > { %252 = sbr.rel (%p249_p9) target bundleno = 1027 (0x403), region = 48 }
  0x13   : > { %p283_p10 = scmp.lt.s32.totalorder %s2034_s28, 1  ;;  %v1971_v0 = vmov 0   ;;  %v291_v2 = vlaneseq  ;;  %v1972_v12 = vmov 0.0   ;;  %vm616_vm3 = vcmask 392192   ;;  %s1846_s15 = sshll.u32 %s2034_s28, 3 }
  0x14   : > { %1898 = vset.pattern.permute.xlu0 %v1971_v0  ;;  %1899 = vset.pattern.permute.xlu2 %v1971_v0  ;;  %s1726_s18 = scalar_lea.hbm %s3295_s7, %s1846_s15  ;;  %s1927_s16 = scalar_lea.hbm %s3295_s7, 16 }
  0x15   : > { %s284_s13 = scalar_select %p283_p10, %s2034_s28, 1  ;;  %v2069_v3 = vand.u32 127, %v291_v2  ;;  %v2078_v5 = vshrl.u32 %v291_v2, 7 }
  0x16   : > { %s1730_s23 = sshll.u32 %s1726_s18, 4  ;;  %s1731_s23 = int_to_ptr.hbm [resolvable:$true] %s1730_s23 }
  0x17   : > { %s1807_s14 = sshll.u32 %s284_s13, 3  ;;  %v2075_v4 = vadd.s32 4294967272, %v2069_v3  ;;  %vm293_vm0 = vcmp.ge.s32.totalorder %v2069_v3, 24  ;;  %v2088_v9 = vadd.s32 16, %v2078_v5  ;;  %v2091_v11 = vadd.s32 8, %v2078_v5  ;;  %s280_s13 = sand.u32 1, %s1961_s25  }
  0x18   : > { %s2066_s17 = scalar_lea.vmem %s3289_s1, %s1807_s14  ;;  %s286_s20 = scalar_lea.vmem %s3288_s0, %s1807_s14  ;;  %v2105_v15 = vadd.s32 32, %v2078_v5  ;;  %v2109_v17 = vadd.s32 24, %v2078_v5  ;;  %v2112_v18 = vadd.s32 40, %v2078_v5  ;;  %v2131_v29 = vadd.s32 56, %v2078_v5 }
  0x19   : > { %v296_v1 = vld [vmem:[%s2066_s17] sm:$0xff]  ;;  %v295_v7 = vsel %vm293_vm0, %v2075_v4, %v2069_v3  ;;  %v2136_v31 = vadd.s32 48, %v2078_v5  ;;  %s1806_s14 = sshll.u32 %s280_s13, 3  ;;  %s1716_s29 = scalar_lea.sflag [#allocation3], %s280_s13 }
  0x1a   : > { %298 = vperm.xlu0 %1898, %v296_v1   ;;  %v2080_v6 = vld [vmem:[%s286_s20] sm:$0xff]  ;;  %s282_s21 = scalar_lea.vmem [#allocation2], %s1806_s14  ;;  %s1921_s8 = sshra.s32 %s1731_s23, 4  ;;  %s1922_s8 = int_to_ptr.hbm [resolvable:$true] %s1921_s8 }
  0x1b   : > { %v2085_v8 = vperm.slane %v2080_v6, 0  ;;  %v323_v24 = vrot.slane %v2080_v6, 3  ;;  %v321_v35 = vrot.slane %v2080_v6, 1  ;;  %v324_v37 = vrot.slane %v2080_v6, 4  ;;  %s1728_s22 = sshll.u32 %s282_s21, 4  ;;  %s1923_s28 = scalar_lea.hbm %s1922_s8, 8  ;;  %s1729_s22 = int_to_ptr.vmem [resolvable:$true] %s1728_s22 }
  0x1c   : > { %v322_v56 = vrot.slane %v2080_v6, 2  ;;  %v325_v57 = vrot.slane %v2080_v6, 5  ;;  %p1924_p11 = scmp.ne.s32.totalorder %s1922_s8, %s1923_s28  ;;  %p1928_p0 = scmp.lt.s32.totalorder %s1922_s8, %s3295_s7 }
  0x1d   : > { %vm338_vm2 = vcmp.eq.s32.totalorder %v2085_v8, %v2088_v9  ;;  %vm337_vm4 = vcmp.eq.s32.totalorder %v2085_v8, %v2091_v11  ;;  %vm336_vm5 = vcmp.eq.s32.totalorder %v2085_v8, %v2078_v5  ;;  %vm340_vm6 = vcmp.eq.s32.totalorder %v2085_v8, %v2105_v15  ;;  %p1929_p1 = scmp.lt.s32.totalorder %s1927_s16, %s1923_s28 }
  0x1e   : > { %vm339_vm7 = vcmp.eq.s32.totalorder %v2085_v8, %v2109_v17  ;;  %vm341_vm8 = vcmp.eq.s32.totalorder %v2085_v8, %v2112_v18  ;;  %v2133_v30 = vperm.slane %v323_v24, 0  ;;  %vm343_vm9 = vcmp.eq.s32.totalorder %v2085_v8, %v2131_v29  ;;  %p1925_p12 = pnand %p1924_p11, %p2051_p5 }
  0x1f   : > { %vm342_vm10 = vcmp.eq.s32.totalorder %v2085_v8, %v2136_v31  ;;  %v2153_v40 = vperm.slane %v321_v35, 0  ;;  %v2158_v44 = vperm.slane %v324_v37, 0  ;;  %v2189_v60 = vperm.slane %v322_v56, 0  ;;  %p1930_p2 = por %p1929_p1, %p1928_p0 }
  0x20   : > { %vm386_vm11 = vcmp.eq.s32.totalorder %v2133_v30, %v2088_v9  ;;  %v2194_v0 = vperm.slane %v325_v57, 0  ;;  %v2236_v35 = vadd.s32 104, %v2078_v5  ;;  %p1926_p13 = pneg %p1925_p12 }
  0x21   : > { %vm353_vm12 = vcmp.eq.s32.totalorder %v2153_v40, %v2091_v11  ;;  %vm401_vm13 = vcmp.eq.s32.totalorder %v2158_v44, %v2091_v11  ;;  %vm352_vm14 = vcmp.eq.s32.totalorder %v2153_v40, %v2078_v5  ;;  %vm354_vm15 = vcmp.eq.s32.totalorder %v2153_v40, %v2088_v9 }
  0x22   : > { %vm402_vm0 = vcmp.eq.s32.totalorder %v2158_v44, %v2088_v9  ;;  %p1931_p3 = pnand %p1930_p2, %p1926_p13 }
  0x8c   : > { %v299_v10 = vpop.permute.xlu0 %298 }
  0x8d   : > { %vm300_vm1 = vcmp.lt.s32.totalorder %v295_v7, %v299_v10 }
  0x8e   : > { %v2093_v13 = vsel %vm300_vm1, 1.0, %v1972_v12  ;;  %vm355_vm1 = vcmp.eq.s32.totalorder %v2153_v40, %v2109_v17 }
  0x8f   : > { %v2098_v14 = vperm.slane %v2093_v13, 0  ;;  %v467_v26 = vrot.slane %v2093_v13, 3  ;;  %v465_v38 = vrot.slane %v2093_v13, 1  ;;  %v468_v41 = vrot.slane %v2093_v13, 4 }
  0x90   : > { %v466_v58 = vrot.slane %v2093_v13, 2  ;;  %v469_v61 = vrot.slane %v2093_v13, 5  ;;  %v470_v37 = vrot.slane %v2093_v13, 6 }
  0x91   : > { %v490_v16 = vsel %vm338_vm2, %v2098_v14, 0.0  ;;  %v489_v20 = vsel %vm337_vm4, %v2098_v14, 0.0  ;;  %v488_v21 = vsel %vm336_vm5, %v2098_v14, 0.0  ;;  %v492_v25 = vsel %vm340_vm6, %v2098_v14, 0.0 }
  0x92   : > { %v623_v19 = vsel %vm616_vm3, %v490_v16, 0.0  ;;  %v620_v22 = vsel %vm616_vm3, %v489_v20, 0.0  ;;  %v617_v23 = vsel %vm616_vm3, %v488_v21, 0.0  ;;  %v491_v27 = vsel %vm339_vm7, %v2098_v14, 0.0 }
  0x93   : > { %624 = vadd.xlane.f32.xlu2 %v623_v19  ;;  %621 = vadd.xlane.f32.xlu1 %v620_v22  ;;  %v493_v28 = vsel %vm341_vm8, %v2098_v14, 0.0  ;;  %v629_v32 = vsel %vm616_vm3, %v492_v25, 0.0  ;;  %v626_v33 = vsel %vm616_vm3, %v491_v27, 0.0  ;;  %v2142_v36 = vperm.slane %v467_v26, 0 }
  0x94   : > { %618 = vadd.xlane.f32.xlu0 %v617_v23  ;;  %v632_v34 = vsel %vm616_vm3, %v493_v28, 0.0  ;;  %v495_v39 = vsel %vm343_vm9, %v2098_v14, 0.0  ;;  %v494_v42 = vsel %vm342_vm10, %v2098_v14, 0.0  ;;  %v2161_v46 = vperm.slane %v465_v38, 0 }
  0x95   : > { %v538_v43 = vsel %vm386_vm11, %v2142_v36, 0.0  ;;  %v638_v45 = vsel %vm616_vm3, %v495_v39, 0.0  ;;  %v635_v47 = vsel %vm616_vm3, %v494_v42, 0.0  ;;  %v2165_v49 = vperm.slane %v468_v41, 0 }
  0x96   : > { %v767_v48 = vsel %vm616_vm3, %v538_v43, 0.0  ;;  %v505_v50 = vsel %vm353_vm12, %v2161_v46, 0.0  ;;  %v504_v52 = vsel %vm352_vm14, %v2161_v46, 0.0  ;;  %v506_v59 = vsel %vm354_vm15, %v2161_v46, 0.0 }
  0x97   : > { %v553_v51 = vsel %vm401_vm13, %v2165_v49, 0.0  ;;  %v668_v53 = vsel %vm616_vm3, %v505_v50, 0.0  ;;  %v665_v55 = vsel %vm616_vm3, %v504_v52, 0.0  ;;  %v554_v62 = vsel %vm402_vm0, %v2165_v49, 0.0 }
  0x98   : > { %v812_v54 = vsel %vm616_vm3, %v553_v51, 0.0  ;;  %v507_v63 = vsel %vm355_vm1, %v2161_v46, 0.0  ;;  %v671_v1 = vsel %vm616_vm3, %v506_v59, 0.0  ;;  %v2197_v2 = vperm.slane %v466_v58, 0 }
  0x99   : > { %v815_v7 = vsel %vm616_vm3, %v554_v62, 0.0  ;;  %v674_v10 = vsel %vm616_vm3, %v507_v63, 0.0  ;;  %v2201_v12 = vperm.slane %v469_v61, 0  ;;  %vm368_vm2 = vcmp.eq.s32.totalorder %v2189_v60, %v2078_v5 }
  0x9a   : > { %vm417_vm4 = vcmp.eq.s32.totalorder %v2194_v0, %v2091_v11  ;;  %vm369_vm5 = vcmp.eq.s32.totalorder %v2189_v60, %v2091_v11  ;;  %v520_v16 = vsel %vm368_vm2, %v2197_v2, 0.0  ;;  %vm370_vm6 = vcmp.eq.s32.totalorder %v2189_v60, %v2088_v9 }
  0x9b   : > { %630 = vadd.xlane.f32.xlu2 %v629_v32  ;;  %627 = vadd.xlane.f32.xlu1 %v626_v33  ;;  %v569_v19 = vsel %vm417_vm4, %v2201_v12, 0.0  ;;  %v521_v20 = vsel %vm369_vm5, %v2197_v2, 0.0  ;;  %v713_v21 = vsel %vm616_vm3, %v520_v16, 0.0  ;;  %vm358_vm7 = vcmp.eq.s32.totalorder %v2153_v40, %v2136_v31 }
  0x9c   : > { %633 = vadd.xlane.f32.xlu0 %v632_v34  ;;  %v860_v22 = vsel %vm616_vm3, %v569_v19, 0.0  ;;  %v716_v23 = vsel %vm616_vm3, %v521_v20, 0.0  ;;  %vm371_vm8 = vcmp.eq.s32.totalorder %v2189_v60, %v2109_v17  ;;  %v522_v24 = vsel %vm370_vm6, %v2197_v2, 0.0 }
  0x9d   : > { %v510_v25 = vsel %vm358_vm7, %v2161_v46, 0.0  ;;  %v523_v26 = vsel %vm371_vm8, %v2197_v2, 0.0  ;;  %v719_v27 = vsel %vm616_vm3, %v522_v24, 0.0  ;;  %vm384_vm9 = vcmp.eq.s32.totalorder %v2133_v30, %v2078_v5 }
  0x9e   : > { %v683_v28 = vsel %vm616_vm3, %v510_v25, 0.0  ;;  %v722_v32 = vsel %vm616_vm3, %v523_v26, 0.0  ;;  %v326_v33 = vrot.slane %v2080_v6, 6  ;;  %vm389_vm10 = vcmp.eq.s32.totalorder %v2133_v30, %v2112_v18 }
  0x9f   : > { %vm385_vm11 = vcmp.eq.s32.totalorder %v2133_v30, %v2091_v11  ;;  %v536_v34 = vsel %vm384_vm9, %v2142_v36, 0.0  ;;  %v541_v38 = vsel %vm389_vm10, %v2142_v36, 0.0  ;;  %v2242_v41 = vadd.s32 96, %v2078_v5 }
  0xa0   : > { %v537_v39 = vsel %vm385_vm11, %v2142_v36, 0.0  ;;  %v2244_v42 = vperm.slane %v326_v33, 0  ;;  %vm381_vm12 = vcmp.eq.s32.totalorder %v2189_v60, %v2236_v35  ;;  %v761_v43 = vsel %vm616_vm3, %v536_v34, 0.0 }
  0xa1   : > { %vm380_vm13 = vcmp.eq.s32.totalorder %v2189_v60, %v2242_v41  ;;  %v2259_v51 = vperm.slane %v470_v37, 0  ;;  %vm357_vm14 = vcmp.eq.s32.totalorder %v2153_v40, %v2112_v18  ;;  %vm356_vm0 = vcmp.eq.s32.totalorder %v2153_v40, %v2105_v15 }
  0xa2   : > { %v2257_v50 = vsel %vm380_vm13, %v2197_v2, 0.0  ;;  %vm432_vm15 = vcmp.eq.s32.totalorder %v2244_v42, %v2078_v5  ;;  %v509_v52 = vsel %vm357_vm14, %v2161_v46, 0.0  ;;  %v2274_v58 = vadd.s32 112, %v2078_v5 }
  0xa3   : > { %639 = vadd.xlane.f32.xlu2 %v638_v45  ;;  %636 = vadd.xlane.f32.xlu1 %v635_v47  ;;  %v2250_v45 = vsel %vm381_vm12, %v2197_v2, 0.0  ;;  %v776_v47 = vsel %vm616_vm3, %v541_v38, 0.0  ;;  %vm400_vm1 = vcmp.eq.s32.totalorder %v2158_v44, %v2078_v5  ;;  %vm375_vm2 = vcmp.eq.s32.totalorder %v2189_v60, %v2131_v29 }
  0xa4   : > { %768 = vadd.xlane.f32.xlu0 %v767_v48  ;;  %v764_v48 = vsel %vm616_vm3, %v537_v39, 0.0  ;;  %vm387_vm4 = vcmp.eq.s32.totalorder %v2133_v30, %v2109_v17  ;;  %vm382_vm5 = vcmp.eq.s32.totalorder %v2189_v60, %v2274_v58  ;;  %v552_v61 = vsel %vm400_vm1, %v2165_v49, 0.0 }
  0xa5   : > { %v2285_v59 = vsel %vm382_vm5, %v2197_v2, 0.0  ;;  %v527_v62 = vsel %vm375_vm2, %v2197_v2, 0.0  ;;  %v539_v63 = vsel %vm387_vm4, %v2142_v36, 0.0  ;;  %vm373_vm6 = vcmp.eq.s32.totalorder %v2189_v60, %v2112_v18 }
  0xa6   : > { %3298 = vst [vmem:[#allocation5_spill] sm:$0xff] %v2285_v59  ;;  %v327_v16 = vrot.slane %v2080_v6, 7  ;;  %vm434_vm7 = vcmp.eq.s32.totalorder %v2244_v42, %v2088_v9  ;;  %vm372_vm8 = vcmp.eq.s32.totalorder %v2189_v60, %v2105_v15  ;;  %v525_v19 = vsel %vm373_vm6, %v2197_v2, 0.0 }
  0xa7   : > { %v471_v20 = vrot.slane %v2093_v13, 7  ;;  %v728_v24 = vsel %vm616_vm3, %v525_v19, 0.0  ;;  %vm416_vm9 = vcmp.eq.s32.totalorder %v2194_v0, %v2078_v5  ;;  %vm403_vm11 = vcmp.eq.s32.totalorder %v2158_v44, %v2109_v17 }
  0xa8   : > { %v568_v13 = vsel %vm416_vm9, %v2201_v12, 0.0  ;;  %v2324_v37 = vadd.s32 64, %v2078_v5  ;;  %vm388_vm12 = vcmp.eq.s32.totalorder %v2133_v30, %v2105_v15  ;;  %vm359_vm14 = vcmp.eq.s32.totalorder %v2153_v40, %v2131_v29 }
  0xa9   : > { %v2309_v26 = vperm.slane %v471_v20, 0  ;;  %v540_v38 = vsel %vm388_vm12, %v2142_v36, 0.0  ;;  %vm418_vm1 = vcmp.eq.s32.totalorder %v2194_v0, %v2088_v9  ;;  %vm374_vm2 = vcmp.eq.s32.totalorder %v2189_v60, %v2136_v31 }
  0xaa   : > { %vm360_vm13 = vcmp.eq.s32.totalorder %v2153_v40, %v2324_v37  ;;  %vm433_vm5 = vcmp.eq.s32.totalorder %v2244_v42, %v2091_v11  ;;  %v2363_v19 = vadd.s32 72, %v2078_v5  ;;  %vm405_vm6 = vcmp.eq.s32.totalorder %v2158_v44, %v2112_v18 }
  0xab   : > { %669 = vadd.xlane.f32.xlu2 %v668_v53  ;;  %666 = vadd.xlane.f32.xlu1 %v665_v55  ;;  %v584_v53 = vsel %vm432_vm15, %v2259_v51, 0.0  ;;  %v680_v55 = vsel %vm616_vm3, %v509_v52, 0.0  ;;  %v512_v39 = vsel %vm360_vm13, %v2161_v46, 0.0  ;;  %vm419_vm15 = vcmp.eq.s32.totalorder %v2194_v0, %v2109_v17 }
  0xac   : > { %813 = vadd.xlane.f32.xlu0 %v812_v54  ;;  %v508_v54 = vsel %vm356_vm0, %v2161_v46, 0.0  ;;  %v905_v56 = vsel %vm616_vm3, %v584_v53, 0.0  ;;  %vm391_vm0 = vcmp.eq.s32.totalorder %v2133_v30, %v2131_v29  ;;  %v571_v53 = vsel %vm419_vm15, %v2201_v12, 0.0 }
  0xad   : > { %v677_v57 = vsel %vm616_vm3, %v508_v54, 0.0  ;;  %v543_v54 = vsel %vm391_vm0, %v2142_v36, 0.0  ;;  %vm345_vm13 = vcmp.eq.s32.totalorder %v2085_v8, %v2363_v19  ;;  %vm1280_vm15 = vcmask 195712  }
  0xae   : > { %vm1284_vm0 = vcmask 261312  }
  0xb3   : > { %672 = vadd.xlane.f32.xlu2 %v671_v1  ;;  %675 = vadd.xlane.f32.xlu1 %v674_v10  ;;  %v809_v1 = vsel %vm616_vm3, %v552_v61, 0.0  ;;  %v770_v10 = vsel %vm616_vm3, %v539_v63, 0.0 }
  0xb4   : > { %816 = vadd.xlane.f32.xlu0 %v815_v7  ;;  %v734_v7 = vsel %vm616_vm3, %v527_v62, 0.0  ;;  %v526_v62 = vsel %vm374_vm2, %v2197_v2, 0.0  ;;  %vm1292_vm2 = vcmask 392512  }
  0xbb   : > { %714 = vadd.xlane.f32.xlu2 %v713_v21  ;;  %717 = vadd.xlane.f32.xlu1 %v716_v23  ;;  %v586_v21 = vsel %vm434_vm7, %v2259_v51, 0.0  ;;  %v2304_v23 = vperm.slane %v327_v16, 0  ;;  %vm377_vm7 = vcmp.eq.s32.totalorder %v2189_v60, %v2363_v19 }
  0xbc   : > { %861 = vadd.xlane.f32.xlu0 %v860_v22  ;;  %v524_v22 = vsel %vm372_vm8, %v2197_v2, 0.0  ;;  %v911_v6 = vsel %vm616_vm3, %v586_v21, 0.0  ;;  %vm404_vm8 = vcmp.eq.s32.totalorder %v2158_v44, %v2105_v15  ;;  %v557_v21 = vsel %vm405_vm6, %v2165_v49, 0.0 }
  0xbd   : > { %v725_v25 = vsel %vm616_vm3, %v524_v22, 0.0  ;;  %vm449_vm10 = vcmp.eq.s32.totalorder %v2304_v23, %v2091_v11  ;;  %vm450_vm4 = vcmp.eq.s32.totalorder %v2304_v23, %v2088_v9  ;;  %vm448_vm9 = vcmp.eq.s32.totalorder %v2304_v23, %v2078_v5 }
  0xbe   : > { %v602_v63 = vsel %vm450_vm4, %v2309_v26, 0.0  ;;  %vm344_vm4 = vcmp.eq.s32.totalorder %v2085_v8, %v2324_v37  ;;  %vm390_vm6 = vcmp.eq.s32.totalorder %v2133_v30, %v2136_v31 }
  0xc3   : > { %720 = vadd.xlane.f32.xlu2 %v719_v27  ;;  %723 = vadd.xlane.f32.xlu1 %v722_v32  ;;  %v601_v27 = vsel %vm449_vm10, %v2309_v26, 0.0  ;;  %v857_v32 = vsel %vm616_vm3, %v568_v13, 0.0  ;;  %vm436_vm10 = vcmp.eq.s32.totalorder %v2244_v42, %v2105_v15 }
  0xc4   : > { %684 = vadd.xlane.f32.xlu0 %v683_v28  ;;  %v555_v28 = vsel %vm403_vm11, %v2165_v49, 0.0  ;;  %v956_v33 = vsel %vm616_vm3, %v601_v27, 0.0  ;;  %vm435_vm11 = vcmp.eq.s32.totalorder %v2244_v42, %v2109_v17 }
  0xc5   : > { %v818_v34 = vsel %vm616_vm3, %v555_v28, 0.0  ;;  %v2380_v28 = vadd.s32 88, %v2078_v5 }
  0xc7   : > { %vm347_vm12 = vcmp.eq.s32.totalorder %v2085_v8, %v2380_v28 }
  0xcb   : > { %762 = vadd.xlane.f32.xlu2 %v761_v43  ;;  %765 = vadd.xlane.f32.xlu1 %v764_v48  ;;  %v511_v43 = vsel %vm359_vm14, %v2161_v46, 0.0  ;;  %v689_v48 = vsel %vm616_vm3, %v512_v39, 0.0  ;;  %v600_v39 = vsel %vm448_vm9, %v2309_v26, 0.0  ;;  %vm1276_vm14 = vcmask 130112  }
  0xcc   : > { %777 = vadd.xlane.f32.xlu0 %v776_v47  ;;  %v773_v47 = vsel %vm616_vm3, %v540_v38, 0.0  ;;  %v686_v52 = vsel %vm616_vm3, %v511_v43, 0.0  ;;  %vm361_vm9 = vcmp.eq.s32.totalorder %v2153_v40, %v2363_v19 }
  0xd3   : > { %681 = vadd.xlane.f32.xlu2 %v680_v55  ;;  %678 = vadd.xlane.f32.xlu1 %v677_v57  ;;  %v570_v55 = vsel %vm418_vm1, %v2201_v12, 0.0  ;;  %v782_v57 = vsel %vm616_vm3, %v543_v54, 0.0  ;;  %vm1288_vm1 = vcmask 326912  }
  0xd4   : > { %906 = vadd.xlane.f32.xlu0 %v905_v56  ;;  %v866_v56 = vsel %vm616_vm3, %v571_v53, 0.0  ;;  %v863_v61 = vsel %vm616_vm3, %v570_v55, 0.0  ;;  %v587_v55 = vsel %vm435_vm11, %v2259_v51, 0.0  ;;  %vm423_vm11 = vcmp.eq.s32.totalorder %v2194_v0, %v2131_v29 }
  0xdb   : > { %810 = vadd.xlane.f32.xlu2 %v809_v1  ;;  %771 = vadd.xlane.f32.xlu1 %v770_v10  ;;  %v585_v1 = vsel %vm433_vm5, %v2259_v51, 0.0  ;;  %v959_v10 = vsel %vm616_vm3, %v602_v63, 0.0  ;;  %vm1296_vm5 = vcmask 458112  }
  0xdc   : > { %735 = vadd.xlane.f32.xlu0 %v734_v7  ;;  %v731_v7 = vsel %vm616_vm3, %v526_v62, 0.0  ;;  %v908_v16 = vsel %vm616_vm3, %v585_v1, 0.0  ;;  %v2403_v1 = vadd.s32 4294967264, %v2069_v3 }
  0xe3   : > { %729 = vadd.xlane.f32.xlu2 %v728_v24  ;;  %726 = vadd.xlane.f32.xlu1 %v725_v25  ;;  %v529_v24 = vsel %vm377_vm7, %v2197_v2, 0.0  ;;  %v824_v25 = vsel %vm616_vm3, %v557_v21, 0.0  ;;  %v914_v21 = vsel %vm616_vm3, %v587_v55, 0.0  ;;  %v496_v55 = vsel %vm344_vm4, %v2098_v14, 0.0 }
  0xe4   : > { %912 = vadd.xlane.f32.xlu0 %v911_v6  ;;  %v556_v6 = vsel %vm404_vm8, %v2165_v49, 0.0  ;;  %v740_v13 = vsel %vm616_vm3, %v529_v24, 0.0  ;;  %vm1300_vm7 = vcmask 523712   ;;  %vm392_vm8 = vcmp.eq.s32.totalorder %v2133_v30, %v2324_v37 }
  0xe5   : > { %v821_v27 = vsel %vm616_vm3, %v556_v6, 0.0 }
  0xeb   : > { %858 = vadd.xlane.f32.xlu2 %v857_v32  ;;  %819 = vadd.xlane.f32.xlu1 %v818_v34  ;;  %v2385_v32 = vadd.s32 4294967288, %v2069_v3 }
  0xec   : > { %957 = vadd.xlane.f32.xlu0 %v956_v33 }
  0xf3   : > { %774 = vadd.xlane.f32.xlu2 %v773_v47  ;;  %687 = vadd.xlane.f32.xlu1 %v686_v52  ;;  %v2396_v52 = vadd.s32 4294967280, %v2069_v3 }
  0xf4   : > { %690 = vadd.xlane.f32.xlu0 %v689_v48  ;;  %v588_v48 = vsel %vm436_vm10, %v2259_v51, 0.0  ;;  %vm421_vm10 = vcmp.eq.s32.totalorder %v2194_v0, %v2112_v18 }
  0xfb   : > { %867 = vadd.xlane.f32.xlu2 %v866_v56  ;;  %864 = vadd.xlane.f32.xlu1 %v863_v61  ;;  %v953_v61 = vsel %vm616_vm3, %v600_v39, 0.0  ;;  %v497_v39 = vsel %vm345_vm13, %v2098_v14, 0.0  ;;  %vm376_vm13 = vcmp.eq.s32.totalorder %v2189_v60, %v2324_v37 }
  0xfc   : > { %783 = vadd.xlane.f32.xlu0 %v782_v57 }
 0x103   : > { %732 = vadd.xlane.f32.xlu2 %v731_v7  ;;  %909 = vadd.xlane.f32.xlu1 %v908_v16 }
 0x104   : > { %960 = vadd.xlane.f32.xlu0 %v959_v10  ;;  %v2406_v10 = vadd.s32 4294967256, %v2069_v3 }
 0x106   : > { %v625_v9 = vpop.xlane.xlu2 %624  ;;  %v622_v11 = vpop.xlane.xlu1 %621 }
 0x107   : > { %v619_v20 = vpop.xlane.xlu0 %618 }
 0x108   : > { %v1001_v22 = vpack.c.bf16 %v622_v11, %v619_v20 }
 0x10a   : > { %v1145_v33 = vunpack.c.l.b16 %v1001_v22  ;;  %v1146_v34 = vunpack.c.h.b16 %v1001_v22 }
 0x10b   : > { %825 = vadd.xlane.f32.xlu2 %v824_v25  ;;  %822 = vadd.xlane.f32.xlu1 %v821_v27 }
 0x10c   : > { %741 = vadd.xlane.f32.xlu0 %v740_v13  ;;  %v1273_v56 = vperm.slane %v1145_v33, %v2069_v3  ;;  %v1275_v57 = vperm.slane %v1146_v34, %v2385_v32 }
 0x10e   : > { %v631_v38 = vpop.xlane.xlu2 %630  ;;  %v628_v43 = vpop.xlane.xlu1 %627  ;;  %v1277_v22 = vsel %vm1276_vm14, %v1275_v57, %v1273_v56 }
 0x10f   : > { %v634_v47 = vpop.xlane.xlu0 %633  ;;  %v1002_v53 = vpack.c.bf16 %v628_v43, %v625_v9  ;;  %v917_v9 = vsel %vm616_vm3, %v588_v48, 0.0  ;;  %v2434_v48 = vadd.s32 4294967240, %v2069_v3 }
 0x110   : > { %v1003_v54 = vpack.c.bf16 %v634_v47, %v631_v38  ;;  %v499_v38 = vsel %vm347_vm12, %v2098_v14, 0.0  ;;  %v2431_v47 = vadd.s32 4294967248, %v2069_v3  ;;  %vm420_vm12 = vcmp.eq.s32.totalorder %v2194_v0, %v2105_v15 }
 0x111   : > { %v1147_v62 = vunpack.c.l.b16 %v1002_v53  ;;  %v1148_v63 = vunpack.c.h.b16 %v1002_v53 }
 0x112   : > { %v1149_v7 = vunpack.c.l.b16 %v1003_v54  ;;  %v1150_v16 = vunpack.c.h.b16 %v1003_v54 }
 0x113   : > { %954 = vadd.xlane.f32.xlu2 %v953_v61  ;;  %v1279_v11 = vperm.slane %v1147_v62, %v2396_v52  ;;  %v1283_v20 = vperm.slane %v1148_v63, %v2075_v4  ;;  %915 = vadd.xlane.f32.xlu1 %v914_v21  ;;  %v644_v61 = vsel %vm616_vm3, %v497_v39, 0.0  ;;  %v650_v62 = vsel %vm616_vm3, %v499_v38, 0.0 }
 0x114   : > { %918 = vadd.xlane.f32.xlu0 %v917_v9  ;;  %v1287_v6 = vperm.slane %v1149_v7, %v2403_v1  ;;  %v1291_v27 = vperm.slane %v1150_v16, %v2406_v10  ;;  %v641_v16 = vsel %vm616_vm3, %v496_v55, 0.0 }
 0x115   : > { %v1281_v24 = vsel %vm1280_vm15, %v1279_v11, %v1277_v22 }
 0x116   : > { %v640_v25 = vpop.xlane.xlu2 %639  ;;  %v1285_v13 = vsel %vm1284_vm0, %v1283_v20, %v1281_v24  ;;  %v637_v33 = vpop.xlane.xlu1 %636  ;;  %v542_v24 = vsel %vm390_vm6, %v2142_v36, 0.0  ;;  %vm451_vm6 = vcmp.eq.s32.totalorder %v2304_v23, %v2109_v17 }
 0x117   : > { %v2419_v34 = vpop.xlane.xlu0 %768  ;;  %v1289_v43 = vsel %vm1288_vm1, %v1287_v6, %v1285_v13  ;;  %v1004_v53 = vpack.c.bf16 %v640_v25, %v637_v33  ;;  %v544_v25 = vsel %vm392_vm8, %v2142_v36, 0.0  ;;  %v513_v13 = vsel %vm361_vm9, %v2161_v46, 0.0 }
 0x118   : > { %v1293_v54 = vsel %vm1292_vm2, %v1291_v27, %v1289_v43  ;;  %v779_v27 = vsel %vm616_vm3, %v542_v24, 0.0  ;;  %v785_v33 = vsel %vm616_vm3, %v544_v25, 0.0  ;;  %v692_v38 = vsel %vm616_vm3, %v513_v13, 0.0 }
 0x119   : > { %v1151_v56 = vunpack.c.l.b16 %v1004_v53  ;;  %v1152_v57 = vunpack.c.h.b16 %v1004_v53  ;;  %v2477_v24 = vadd.s32 80, %v2078_v5  ;;  %vm407_vm8 = vcmp.eq.s32.totalorder %v2158_v44, %v2131_v29 }
 0x11a   : > { %vm409_vm9 = vcmp.eq.s32.totalorder %v2158_v44, %v2363_v19 }
 0x11b   : > { %645 = vadd.xlane.f32.xlu2 %v644_v61  ;;  %v1295_v63 = vperm.slane %v1151_v56, %v2431_v47  ;;  %v1299_v7 = vperm.slane %v1152_v57, %v2434_v48  ;;  %642 = vadd.xlane.f32.xlu1 %v641_v16  ;;  %v573_v56 = vsel %vm421_vm10, %v2201_v12, 0.0  ;;  %v575_v61 = vsel %vm423_vm11, %v2201_v12, 0.0 }
 0x11c   : > { %651 = vadd.xlane.f32.xlu0 %v650_v62  ;;  %vm378_vm4 = vcmp.eq.s32.totalorder %v2189_v60, %v2477_v24  ;;  %vm406_vm10 = vcmp.eq.s32.totalorder %v2158_v44, %v2136_v31  ;;  %vm346_vm11 = vcmp.eq.s32.totalorder %v2085_v8, %v2477_v24 }
 0x11d   : > { %v1297_v9 = vsel %vm1296_vm5, %v1295_v63, %v1293_v54 }
 0x11e   : > { %v670_v11 = vpop.xlane.xlu2 %669  ;;  %v2451_v20 = vsel %vm1300_vm7, %v1299_v7, %v1297_v9  ;;  %v667_v22 = vpop.xlane.xlu1 %666  ;;  %v572_v7 = vsel %vm420_vm12, %v2201_v12, 0.0  ;;  %vm348_vm12 = vcmp.eq.s32.totalorder %v2085_v8, %v2242_v41 }
 0x11f   : > { %v2453_v21 = vpop.xlane.xlu0 %813  ;;  %v1009_v6 = vpack.c.bf16 %v670_v11, %v667_v22  ;;  %v872_v11 = vsel %vm616_vm3, %v573_v56, 0.0  ;;  %v878_v22 = vsel %vm616_vm3, %v575_v61, 0.0  ;;  %v869_v13 = vsel %vm616_vm3, %v572_v7, 0.0 }
 0x120   : > { %v603_v61 = vsel %vm451_vm6, %v2309_v26, 0.0  ;;  %vm365_vm6 = vcmp.eq.s32.totalorder %v2153_v40, %v2236_v35 }
 0x121   : > { %v1161_v39 = vunpack.c.l.b16 %v1009_v6  ;;  %v1162_v43 = vunpack.c.h.b16 %v1009_v6  ;;  %v962_v17 = vsel %vm616_vm3, %v603_v61, 0.0 }
 0x123   : > { %780 = vadd.xlane.f32.xlu2 %v779_v27  ;;  %693 = vadd.xlane.f32.xlu1 %v692_v38  ;;  %v1334_v62 = vperm.slane %v1161_v39, %v2069_v3  ;;  %v1335_v63 = vperm.slane %v1162_v43, %v2385_v32 }
 0x124   : > { %786 = vadd.xlane.f32.xlu0 %v785_v33 }
 0x125   : > { %v1336_v27 = vsel %vm1276_vm14, %v1335_v63, %v1334_v62 }
 0x126   : > { %v673_v53 = vpop.xlane.xlu2 %672  ;;  %v676_v55 = vpop.xlane.xlu1 %675 }
 0x127   : > { %v2467_v54 = vpop.xlane.xlu0 %816  ;;  %v1010_v57 = vpack.c.bf16 %v676_v55, %v673_v53  ;;  %v528_v55 = vsel %vm376_vm13, %v2197_v2, 0.0  ;;  %vm437_vm13 = vcmp.eq.s32.totalorder %v2244_v42, %v2112_v18 }
 0x128   : > { %v737_v62 = vsel %vm616_vm3, %v528_v55, 0.0 }
 0x129   : > { %v1163_v16 = vunpack.c.l.b16 %v1010_v57  ;;  %v1164_v9 = vunpack.c.h.b16 %v1010_v57  ;;  %v530_v57 = vsel %vm378_vm4, %v2197_v2, 0.0  ;;  %vm363_vm4 = vcmp.eq.s32.totalorder %v2153_v40, %v2380_v28 }
 0x12a   : > { %v743_v63 = vsel %vm616_vm3, %v530_v57, 0.0 }
 0x12b   : > { %873 = vadd.xlane.f32.xlu2 %v872_v11  ;;  %v1337_v6 = vperm.slane %v1163_v16, %v2396_v52  ;;  %v1339_v25 = vperm.slane %v1164_v9, %v2075_v4  ;;  %870 = vadd.xlane.f32.xlu1 %v869_v13  ;;  %v561_v13 = vsel %vm409_vm9, %v2165_v49, 0.0  ;;  %vm422_vm9 = vcmp.eq.s32.totalorder %v2194_v0, %v2136_v31 }
 0x12c   : > { %879 = vadd.xlane.f32.xlu0 %v878_v22  ;;  %v836_v57 = vsel %vm616_vm3, %v561_v13, 0.0 }
 0x12d   : > { %v1338_v33 = vsel %vm1280_vm15, %v1337_v6, %v1336_v27  ;;  %v559_v6 = vsel %vm407_vm8, %v2165_v49, 0.0  ;;  %vm362_vm8 = vcmp.eq.s32.totalorder %v2153_v40, %v2477_v24 }
 0x12e   : > { %v715_v38 = vpop.xlane.xlu2 %714  ;;  %v2491_v39 = vsel %vm1284_vm0, %v1339_v25, %v1338_v33  ;;  %v718_v53 = vpop.xlane.xlu1 %717 }
 0x12f   : > { %v2493_v43 = vpop.xlane.xlu0 %861  ;;  %v1017_v56 = vpack.c.bf16 %v718_v53, %v715_v38  ;;  %v558_v38 = vsel %vm406_vm10, %v2165_v49, 0.0  ;;  %vm424_vm10 = vcmp.eq.s32.totalorder %v2194_v0, %v2324_v37 }
 0x131   : > { %v1177_v7 = vunpack.c.l.b16 %v1017_v56  ;;  %v1178_v16 = vunpack.c.h.b16 %v1017_v56  ;;  %v830_v56 = vsel %vm616_vm3, %v559_v6, 0.0 }
 0x133   : > { %738 = vadd.xlane.f32.xlu2 %v737_v62  ;;  %963 = vadd.xlane.f32.xlu1 %v962_v17  ;;  %v1365_v27 = vperm.slane %v1177_v7, %v2069_v3  ;;  %v1366_v33 = vperm.slane %v1178_v16, %v2385_v32 }
 0x134   : > { %744 = vadd.xlane.f32.xlu0 %v743_v63  ;;  %v827_v63 = vsel %vm616_vm3, %v558_v38, 0.0 }
 0x135   : > { %v1367_v17 = vsel %vm1276_vm14, %v1366_v33, %v1365_v27  ;;  %v500_v27 = vsel %vm348_vm12, %v2098_v14, 0.0  ;;  %v589_v33 = vsel %vm437_vm13, %v2259_v51, 0.0  ;;  %vm453_vm12 = vcmp.eq.s32.totalorder %v2304_v23, %v2112_v18 }
 0x136   : > { %v721_v9 = vpop.xlane.xlu2 %720  ;;  %v724_v22 = vpop.xlane.xlu1 %723  ;;  %vm455_vm13 = vcmp.eq.s32.totalorder %v2304_v23, %v2131_v29  ;;  %v605_v18 = vsel %vm453_vm12, %v2309_v26, 0.0  ;;  %vm438_vm12 = vcmp.eq.s32.totalorder %v2244_v42, %v2136_v31 }
 0x137   : > { %v2507_v11 = vpop.xlane.xlu0 %684  ;;  %v1018_v25 = vpack.c.bf16 %v724_v22, %v721_v9 }
 0x139   : > { %v1179_v53 = vunpack.c.l.b16 %v1018_v25  ;;  %v1180_v55 = vunpack.c.h.b16 %v1018_v25  ;;  %v498_v25 = vsel %vm346_vm11, %v2098_v14, 0.0  ;;  %vm393_vm11 = vcmp.eq.s32.totalorder %v2133_v30, %v2363_v19 }
 0x13a   : > { %v647_v38 = vsel %vm616_vm3, %v498_v25, 0.0 }
 0x13b   : > { %831 = vadd.xlane.f32.xlu2 %v830_v56  ;;  %v1368_v61 = vperm.slane %v1179_v53, %v2396_v52  ;;  %v1370_v62 = vperm.slane %v1180_v55, %v2075_v4  ;;  %828 = vadd.xlane.f32.xlu1 %v827_v63  ;;  %v653_v53 = vsel %vm616_vm3, %v500_v27, 0.0  ;;  %v920_v55 = vsel %vm616_vm3, %v589_v33, 0.0 }
 0x13c   : > { %837 = vadd.xlane.f32.xlu0 %v836_v57 }
 0x13d   : > { %v1369_v7 = vsel %vm1280_vm15, %v1368_v61, %v1367_v17  ;;  %v517_v17 = vsel %vm365_vm6, %v2161_v46, 0.0  ;;  %vm408_vm6 = vcmp.eq.s32.totalorder %v2158_v44, %v2324_v37 }
 0x13e   : > { %v763_v16 = vpop.xlane.xlu2 %762  ;;  %v2528_v9 = vsel %vm1284_vm0, %v1370_v62, %v1369_v7  ;;  %v766_v6 = vpop.xlane.xlu1 %765  ;;  %v515_v62 = vsel %vm363_vm4, %v2161_v46, 0.0  ;;  %v514_v7 = vsel %vm362_vm8, %v2161_v46, 0.0  ;;  %v704_v27 = vsel %vm616_vm3, %v517_v17, 0.0 }
 0x13f   : > { %v2530_v22 = vpop.xlane.xlu0 %777  ;;  %v1025_v13 = vpack.c.bf16 %v766_v6, %v763_v16  ;;  %v698_v25 = vsel %vm616_vm3, %v515_v62, 0.0  ;;  %vm452_vm4 = vcmp.eq.s32.totalorder %v2304_v23, %v2105_v15  ;;  %vm410_vm8 = vcmp.eq.s32.totalorder %v2158_v44, %v2477_v24 }
 0x143   : > { %648 = vadd.xlane.f32.xlu2 %v647_v38  ;;  %921 = vadd.xlane.f32.xlu1 %v920_v55  ;;  %v1193_v55 = vunpack.c.l.b16 %v1025_v13 }
 0x144   : > { %654 = vadd.xlane.f32.xlu0 %v653_v53  ;;  %v695_v53 = vsel %vm616_vm3, %v514_v7, 0.0 }
 0x146   : > { %v682_v56 = vpop.xlane.xlu2 %681  ;;  %v679_v61 = vpop.xlane.xlu1 %678 }
 0x147   : > { %v2544_v57 = vpop.xlane.xlu0 %906  ;;  %v1011_v63 = vpack.c.bf16 %v682_v56, %v679_v61  ;;  %v1194_v56 = vunpack.c.h.b16 %v1025_v13  ;;  %v574_v13 = vsel %vm422_vm9, %v2201_v12, 0.0  ;;  %vm379_vm9 = vcmp.eq.s32.totalorder %v2189_v60, %v2380_v28 }
 0x149   : > { %v1165_v16 = vunpack.c.l.b16 %v1011_v63  ;;  %v1166_v6 = vunpack.c.h.b16 %v1011_v63 }
 0x14b   : > { %699 = vadd.xlane.f32.xlu2 %v698_v25  ;;  %v1341_v33 = vperm.slane %v1165_v16, %v2403_v1  ;;  %v1343_v38 = vperm.slane %v1166_v6, %v2406_v10  ;;  %696 = vadd.xlane.f32.xlu1 %v695_v53  ;;  %v576_v25 = vsel %vm424_vm10, %v2201_v12, 0.0  ;;  %vm439_vm10 = vcmp.eq.s32.totalorder %v2244_v42, %v2131_v29 }
 0x14c   : > { %705 = vadd.xlane.f32.xlu0 %v704_v27  ;;  %v1397_v27 = vperm.slane %v1194_v56, %v2385_v32  ;;  %v881_v59 = vsel %vm616_vm3, %v576_v25, 0.0 }
 0x14d   : > { %v1342_v61 = vsel %vm1288_vm1, %v1341_v33, %v2491_v39  ;;  %v1396_v39 = vperm.slane %v1193_v55, %v2069_v3  ;;  %v545_v33 = vsel %vm393_vm11, %v2142_v36, 0.0  ;;  %vm441_vm11 = vcmp.eq.s32.totalorder %v2244_v42, %v2363_v19 }
 0x14e   : > { %v811_v62 = vpop.xlane.xlu2 %810  ;;  %v2563_v63 = vsel %vm1292_vm2, %v1343_v38, %v1342_v61  ;;  %v772_v16 = vpop.xlane.xlu1 %771  ;;  %v875_v61 = vsel %vm616_vm3, %v574_v13, 0.0 }
 0x14f   : > { %v2565_v17 = vpop.xlane.xlu0 %735  ;;  %v1033_v7 = vpack.c.bf16 %v2453_v21, %v811_v62  ;;  %v1026_v6 = vpack.c.bf16 %v772_v16, %v2419_v34  ;;  %v788_v34 = vsel %vm616_vm3, %v545_v33, 0.0  ;;  %v1398_v55 = vsel %vm1276_vm14, %v1397_v27, %v1396_v39 }
 0x150   : > { %v607_v39 = vsel %vm455_vm13, %v2309_v26, 0.0  ;;  %v604_v27 = vsel %vm452_vm4, %v2309_v26, 0.0  ;;  %vm364_vm13 = vcmp.eq.s32.totalorder %v2153_v40, %v2242_v41  ;;  %vm366_vm4 = vcmp.eq.s32.totalorder %v2153_v40, %v2274_v58 }
 0x151   : > { %v1195_v53 = vunpack.c.l.b16 %v1026_v6  ;;  %v1196_v38 = vunpack.c.h.b16 %v1026_v6 }
 0x153   : > { %876 = vadd.xlane.f32.xlu2 %v875_v61  ;;  %v1399_v21 = vperm.slane %v1195_v53, %v2396_v52  ;;  %v1401_v62 = vperm.slane %v1196_v38, %v2075_v4  ;;  %789 = vadd.xlane.f32.xlu1 %v788_v34  ;;  %v968_v38 = vsel %vm616_vm3, %v605_v18, 0.0  ;;  %v974_v61 = vsel %vm616_vm3, %v607_v39, 0.0 }
 0x154   : > { %882 = vadd.xlane.f32.xlu0 %v881_v59  ;;  %v1209_v34 = vunpack.c.l.b16 %v1033_v7  ;;  %v560_v39 = vsel %vm408_vm6, %v2165_v49, 0.0  ;;  %vm349_vm6 = vcmp.eq.s32.totalorder %v2085_v8, %v2236_v35 }
 0x155   : > { %v1400_v56 = vsel %vm1280_vm15, %v1399_v21, %v1398_v55  ;;  %v1210_v55 = vunpack.c.h.b16 %v1033_v7 }
 0x156   : > { %v730_v16 = vpop.xlane.xlu2 %729  ;;  %v2588_v13 = vsel %vm1284_vm0, %v1401_v62, %v1400_v56  ;;  %v727_v6 = vpop.xlane.xlu1 %726  ;;  %v965_v62 = vsel %vm616_vm3, %v604_v27, 0.0 }
 0x157   : > { %v2590_v59 = vpop.xlane.xlu0 %912  ;;  %v1019_v25 = vpack.c.bf16 %v730_v16, %v727_v6 }
 0x159   : > { %v1181_v33 = vunpack.c.l.b16 %v1019_v25  ;;  %v1182_v53 = vunpack.c.h.b16 %v1019_v25 }
 0x15b   : > { %969 = vadd.xlane.f32.xlu2 %v968_v38  ;;  %v1372_v15 = vperm.slane %v1181_v33, %v2403_v1  ;;  %v1374_v21 = vperm.slane %v1182_v53, %v2406_v10  ;;  %966 = vadd.xlane.f32.xlu1 %v965_v62  ;;  %v562_v33 = vsel %vm410_vm8, %v2165_v49, 0.0  ;;  %v1428_v53 = vperm.slane %v1210_v55, %v2385_v32 }
 0x15c   : > { %975 = vadd.xlane.f32.xlu0 %v974_v61  ;;  %v531_v38 = vsel %vm379_vm9, %v2197_v2, 0.0  ;;  %vm395_vm8 = vcmp.eq.s32.totalorder %v2133_v30, %v2380_v28  ;;  %vm397_vm9 = vcmp.eq.s32.totalorder %v2133_v30, %v2236_v35 }
 0x15d   : > { %v1373_v56 = vsel %vm1288_vm1, %v1372_v15, %v2528_v9  ;;  %v1427_v9 = vperm.slane %v1209_v34, %v2069_v3 }
 0x15e   : > { %v859_v16 = vpop.xlane.xlu2 %858  ;;  %v2609_v6 = vsel %vm1292_vm2, %v1374_v21, %v1373_v56  ;;  %v820_v7 = vpop.xlane.xlu1 %819  ;;  %v833_v21 = vsel %vm616_vm3, %v560_v39, 0.0 }
 0x15f   : > { %v2611_v18 = vpop.xlane.xlu0 %957  ;;  %v2614_v25 = vpack.c.bf16 %v2493_v43, %v859_v16  ;;  %v1034_v27 = vpack.c.bf16 %v820_v7, %v2467_v54  ;;  %v839_v43 = vsel %vm616_vm3, %v562_v33, 0.0  ;;  %v746_v54 = vsel %vm616_vm3, %v531_v38, 0.0 }
 0x160   : > { %v1429_v34 = vsel %vm1276_vm14, %v1428_v53, %v1427_v9  ;;  %v591_v33 = vsel %vm439_vm10, %v2259_v51, 0.0  ;;  %v593_v53 = vsel %vm441_vm11, %v2259_v51, 0.0  ;;  %vm394_vm10 = vcmp.eq.s32.totalorder %v2133_v30, %v2477_v24 }
 0x161   : > { %v1211_v61 = vunpack.c.l.b16 %v1034_v27  ;;  %v1212_v15 = vunpack.c.h.b16 %v1034_v27  ;;  %vm454_vm11 = vcmp.eq.s32.totalorder %v2304_v23, %v2136_v31 }
 0x163   : > { %834 = vadd.xlane.f32.xlu2 %v833_v21  ;;  %v1430_v62 = vperm.slane %v1211_v61, %v2396_v52  ;;  %v1432_v56 = vperm.slane %v1212_v15, %v2075_v4  ;;  %747 = vadd.xlane.f32.xlu1 %v746_v54  ;;  %v590_v15 = vsel %vm438_vm12, %v2259_v51, 0.0  ;;  %vm456_vm12 = vcmp.eq.s32.totalorder %v2304_v23, %v2324_v37 }
 0x164   : > { %840 = vadd.xlane.f32.xlu0 %v839_v43 }
 0x165   : > { %v1431_v55 = vsel %vm1280_vm15, %v1430_v62, %v1429_v34  ;;  %v926_v62 = vsel %vm616_vm3, %v591_v33, 0.0 }
 0x166   : > { %v775_v16 = vpop.xlane.xlu2 %774  ;;  %v2636_v7 = vsel %vm1284_vm0, %v1432_v56, %v1431_v55  ;;  %v688_v29 = vpop.xlane.xlu1 %687  ;;  %v923_v55 = vsel %vm616_vm3, %v590_v15, 0.0 }
 0x167   : > { %v2638_v39 = vpop.xlane.xlu0 %690  ;;  %v1027_v27 = vpack.c.bf16 %v2530_v22, %v775_v16  ;;  %v1012_v9 = vpack.c.bf16 %v688_v29, %v2507_v11  ;;  %v932_v22 = vsel %vm616_vm3, %v593_v53, 0.0  ;;  %v1225_v16 = vunpack.c.l.b16 %v2614_v25 }
 0x169   : > { %v1197_v38 = vunpack.c.l.b16 %v1027_v27  ;;  %v1198_v61 = vunpack.c.h.b16 %v1027_v27  ;;  %v1167_v21 = vunpack.c.l.b16 %v1012_v9  ;;  %v1168_v43 = vunpack.c.h.b16 %v1012_v9 }
 0x16a   : > { %v1226_v27 = vunpack.c.h.b16 %v2614_v25 }
 0x16b   : > { %v1403_v56 = vperm.slane %v1197_v38, %v2403_v1  ;;  %v1405_v54 = vperm.slane %v1198_v61, %v2406_v10  ;;  %927 = vadd.xlane.f32.xlu2 %v926_v62  ;;  %v1345_v34 = vperm.slane %v1167_v21, %v2431_v47  ;;  %v1347_v11 = vperm.slane %v1168_v43, %v2434_v48 }
 0x16c   : > { %933 = vadd.xlane.f32.xlu0 %v932_v22  ;;  %924 = vadd.xlane.f32.xlu1 %v923_v55  ;;  %v516_v61 = vsel %vm364_vm13, %v2161_v46, 0.0  ;;  %v518_v21 = vsel %vm366_vm4, %v2161_v46, 0.0  ;;  %v1458_v43 = vperm.slane %v1225_v16, %v2069_v3  ;;  %v1459_v62 = vperm.slane %v1226_v27, %v2385_v32 }
 0x16d   : > { %v1404_v29 = vsel %vm1288_vm1, %v1403_v56, %v2588_v13  ;;  %v1346_v9 = vsel %vm1296_vm5, %v1345_v34, %v2563_v63  ;;  %v501_v63 = vsel %vm349_vm6, %v2098_v14, 0.0  ;;  %v701_v22 = vsel %vm616_vm3, %v516_v61, 0.0 }
 0x16e   : > { %v2661_v33 = vsel %vm1292_vm2, %v1405_v54, %v1404_v29  ;;  %v868_v53 = vpop.xlane.xlu2 %867  ;;  %v2668_v38 = vsel %vm1300_vm7, %v1347_v11, %v1346_v9  ;;  %v865_v13 = vpop.xlane.xlu1 %864  ;;  %v707_v34 = vsel %vm616_vm3, %v518_v21, 0.0  ;;  %v656_v29 = vsel %vm616_vm3, %v501_v63, 0.0 }
 0x16f   : > { %v2670_v25 = vpop.xlane.xlu0 %783  ;;  %v1042_v15 = vpack.c.bf16 %v868_v53, %v865_v13  ;;  %v1460_v16 = vsel %vm1276_vm14, %v1459_v62, %v1458_v43  ;;  %v547_v21 = vsel %vm395_vm8, %v2142_v36, 0.0  ;;  %v549_v62 = vsel %vm397_vm9, %v2142_v36, 0.0 }
 0x170   : > { %vm425_vm13 = vcmp.eq.s32.totalorder %v2194_v0, %v2363_v19  ;;  %vm440_vm6 = vcmp.eq.s32.totalorder %v2244_v42, %v2324_v37  ;;  %vm442_vm8 = vcmp.eq.s32.totalorder %v2244_v42, %v2477_v24  ;;  %vm411_vm9 = vcmp.eq.s32.totalorder %v2158_v44, %v2380_v28 }
 0x171   : > { %v1227_v56 = vunpack.c.l.b16 %v1042_v15  ;;  %v1228_v54 = vunpack.c.h.b16 %v1042_v15 }
 0x173   : > { %702 = vadd.xlane.f32.xlu2 %v701_v22  ;;  %v1461_v11 = vperm.slane %v1227_v56, %v2396_v52  ;;  %v1463_v55 = vperm.slane %v1228_v54, %v2075_v4  ;;  %v546_v54 = vsel %vm394_vm10, %v2142_v36, 0.0  ;;  %v794_v22 = vsel %vm616_vm3, %v547_v21, 0.0 }
 0x174   : > { %708 = vadd.xlane.f32.xlu0 %v707_v34  ;;  %657 = vadd.xlane.f32.xlu1 %v656_v29  ;;  %vm1304_vm10 = vcmask 589312  }
 0x175   : > { %v1462_v27 = vsel %vm1280_vm15, %v1461_v11, %v1460_v16 }
 0x176   : > { %v733_v9 = vpop.xlane.xlu2 %732  ;;  %v2691_v53 = vsel %vm1284_vm0, %v1463_v55, %v1462_v27  ;;  %v910_v15 = vpop.xlane.xlu1 %909  ;;  %v800_v55 = vsel %vm616_vm3, %v549_v62, 0.0 }
 0x177   : > { %v2693_v13 = vpop.xlane.xlu0 %960  ;;  %v1020_v61 = vpack.c.bf16 %v2565_v17, %v733_v9  ;;  %v1049_v43 = vpack.c.bf16 %v910_v15, %v2544_v57  ;;  %v791_v17 = vsel %vm616_vm3, %v546_v54, 0.0  ;;  %v608_v15 = vsel %vm456_vm12, %v2309_v26, 0.0 }
 0x178   : > { %v2724_v54 = vadd.s32 120, %v2078_v5 }
 0x179   : > { %v1183_v63 = vunpack.c.l.b16 %v1020_v61  ;;  %v1184_v56 = vunpack.c.h.b16 %v1020_v61  ;;  %v606_v61 = vsel %vm454_vm11, %v2309_v26, 0.0 }
 0x17a   : > { %vm383_vm4 = vcmp.eq.s32.totalorder %v2189_v60, %v2724_v54  ;;  %vm399_vm11 = vcmp.eq.s32.totalorder %v2133_v30, %v2724_v54  ;;  %vm351_vm12 = vcmp.eq.s32.totalorder %v2085_v8, %v2724_v54 }
 0x17b   : > { %v1376_v34 = vperm.slane %v1183_v63, %v2431_v47  ;;  %v1378_v11 = vperm.slane %v1184_v56, %v2434_v48  ;;  %795 = vadd.xlane.f32.xlu2 %v794_v22  ;;  %v971_v63 = vsel %vm616_vm3, %v606_v61, 0.0  ;;  %v977_v56 = vsel %vm616_vm3, %v608_v15, 0.0 }
 0x17c   : > { %801 = vadd.xlane.f32.xlu0 %v800_v55  ;;  %792 = vadd.xlane.f32.xlu1 %v791_v17  ;;  %v1241_v55 = vunpack.c.l.b16 %v1049_v43  ;;  %v1242_v17 = vunpack.c.h.b16 %v1049_v43  ;;  %v535_v15 = vsel %vm383_vm4, %v2197_v2, 0.0  ;;  %vm350_vm4 = vcmp.eq.s32.totalorder %v2085_v8, %v2274_v58 }
 0x17d   : > { %v1377_v57 = vsel %vm1296_vm5, %v1376_v34, %v2609_v6  ;;  %v577_v6 = vsel %vm425_vm13, %v2201_v12, 0.0  ;;  %vm1308_vm13 = vcmask 654912  }
 0x17e   : > { %v2712_v29 = vsel %vm1300_vm7, %v1378_v11, %v1377_v57  ;;  %v826_v16 = vpop.xlane.xlu2 %825  ;;  %v823_v9 = vpop.xlane.xlu1 %822  ;;  %v884_v11 = vsel %vm616_vm3, %v577_v6, 0.0  ;;  %v1489_v60 = vperm.slane %v1241_v55, %v2069_v3  ;;  %v1490_v43 = vperm.slane %v1242_v17, %v2385_v32 }
 0x17f   : > { %v2716_v27 = vpop.xlane.xlu0 %741  ;;  %v1035_v31 = vpack.c.bf16 %v826_v16, %v823_v9  ;;  %v2766_v55 = vadd.s32 4294967232, %v2069_v3  ;;  %v2769_v17 = vadd.s32 4294967224, %v2069_v3 }
 0x181   : > { %v1213_v21 = vunpack.c.l.b16 %v1035_v31  ;;  %v1214_v62 = vunpack.c.h.b16 %v1035_v31 }
 0x183   : > { %972 = vadd.xlane.f32.xlu2 %v971_v63  ;;  %v1434_v22 = vperm.slane %v1213_v21, %v2403_v1  ;;  %v1436_v34 = vperm.slane %v1214_v62, %v2406_v10  ;;  %v758_v63 = vsel %vm616_vm3, %v535_v15, 0.0 }
 0x184   : > { %978 = vadd.xlane.f32.xlu0 %v977_v56  ;;  %885 = vadd.xlane.f32.xlu1 %v884_v11  ;;  %v594_v11 = vsel %vm442_vm8, %v2259_v51, 0.0  ;;  %vm458_vm8 = vcmp.eq.s32.totalorder %v2304_v23, %v2477_v24 }
 0x185   : > { %v1435_v57 = vsel %vm1288_vm1, %v1434_v22, %v2636_v7  ;;  %v752_v7 = vsel %vm616_vm3, %v2250_v45, 0.0  ;;  %v1491_v45 = vsel %vm1276_vm14, %v1490_v43, %v1489_v60  ;;  %v935_v43 = vsel %vm616_vm3, %v594_v11, 0.0 }
 0x186   : > { %v955_v16 = vpop.xlane.xlu2 %954  ;;  %v2734_v5 = vsel %vm1292_vm2, %v1436_v34, %v1435_v57  ;;  %v916_v31 = vpop.xlane.xlu1 %915 }
 0x187   : > { %v2737_v9 = vpack.c.bf16 %v2611_v18, %v955_v16  ;;  %v2739_v61 = vpop.xlane.xlu0 %918  ;;  %v1050_v6 = vpack.c.bf16 %v916_v31, %v2590_v59  ;;  %v749_v18 = vsel %vm616_vm3, %v2257_v50, 0.0  ;;  %v592_v50 = vsel %vm440_vm6, %v2259_v51, 0.0 }
 0x188   : > { %v563_v16 = vsel %vm411_vm9, %v2165_v49, 0.0  ;;  %v929_v15 = vsel %vm616_vm3, %v592_v50, 0.0  ;;  %vm396_vm6 = vcmp.eq.s32.totalorder %v2133_v30, %v2242_v41  ;;  %vm367_vm9 = vcmp.eq.s32.totalorder %v2153_v40, %v2724_v54 }
 0x189   : > { %v1243_v21 = vunpack.c.l.b16 %v1050_v6  ;;  %v1244_v62 = vunpack.c.h.b16 %v1050_v6 }
 0x18b   : > { %753 = vadd.xlane.f32.xlu2 %v752_v7  ;;  %v1492_v2 = vperm.slane %v1243_v21, %v2396_v52  ;;  %v1494_v59 = vperm.slane %v1244_v62, %v2075_v4  ;;  %v842_v7 = vsel %vm616_vm3, %v563_v16, 0.0 }
 0x18c   : > { %759 = vadd.xlane.f32.xlu0 %v758_v63  ;;  %750 = vadd.xlane.f32.xlu1 %v749_v18 }
 0x18d   : > { %v1493_v22 = vsel %vm1280_vm15, %v1492_v2, %v1491_v45  ;;  %v503_v45 = vsel %vm351_vm12, %v2098_v14, 0.0  ;;  %vm427_vm12 = vcmp.eq.s32.totalorder %v2194_v0, %v2380_v28 }
 0x18e   : > { %v646_v56 = vpop.xlane.xlu2 %645  ;;  %v2762_v37 = vsel %vm1284_vm0, %v1494_v59, %v1493_v22  ;;  %v643_v34 = vpop.xlane.xlu1 %642  ;;  %v551_v59 = vsel %vm399_vm11, %v2142_v36, 0.0  ;;  %vm415_vm11 = vcmp.eq.s32.totalorder %v2158_v44, %v2724_v54 }
 0x18f   : > { %v1005_v57 = vpack.c.bf16 %v646_v56, %v643_v34  ;;  %v2772_v31 = vpop.xlane.xlu0 %651  ;;  %v806_v8 = vsel %vm616_vm3, %v551_v59, 0.0  ;;  %v610_v59 = vsel %vm458_vm8, %v2309_v26, 0.0  ;;  %vm457_vm8 = vcmp.eq.s32.totalorder %v2304_v23, %v2363_v19 }
 0x190   : > { %v983_v40 = vsel %vm616_vm3, %v610_v59, 0.0 }
 0x191   : > { %v1153_v6 = vunpack.c.l.b16 %v1005_v57  ;;  %v1154_v60 = vunpack.c.h.b16 %v1005_v57  ;;  %v502_v57 = vsel %vm350_vm4, %v2098_v14, 0.0  ;;  %vm426_vm4 = vcmp.eq.s32.totalorder %v2194_v0, %v2477_v24 }
 0x193   : > { %930 = vadd.xlane.f32.xlu2 %v929_v15  ;;  %v1303_v21 = vperm.slane %v1153_v6, %v2766_v55  ;;  %v1307_v62 = vperm.slane %v1154_v60, %v2769_v17 }
 0x194   : > { %936 = vadd.xlane.f32.xlu0 %v935_v43  ;;  %843 = vadd.xlane.f32.xlu1 %v842_v7  ;;  %v659_v43 = vsel %vm616_vm3, %v502_v57, 0.0 }
 0x195   : > { %v1305_v18 = vsel %vm1304_vm10, %v1303_v21, %v2451_v20  ;;  %v662_v20 = vsel %vm616_vm3, %v503_v45, 0.0 }
 0x196   : > { %v781_v63 = vpop.xlane.xlu2 %780  ;;  %v2791_v56 = vsel %vm1308_vm13, %v1307_v62, %v1305_v18  ;;  %v694_v22 = vpop.xlane.xlu1 %693 }
 0x197   : > { %v1028_v2 = vpack.c.bf16 %v2670_v25, %v781_v63  ;;  %v1013_v11 = vpack.c.bf16 %v694_v22, %v2638_v39  ;;  %v2799_v60 = vpop.xlane.xlu0 %786  ;;  %v519_v22 = vsel %vm367_vm9, %v2161_v46, 0.0  ;;  %vm1312_vm9 = vcmask 720512  }
 0x199   : > { %v1199_v50 = vunpack.c.l.b16 %v1028_v2  ;;  %v1200_v34 = vunpack.c.h.b16 %v1028_v2  ;;  %v1169_v15 = vunpack.c.l.b16 %v1013_v11  ;;  %v1170_v6 = vunpack.c.h.b16 %v1013_v11 }
 0x19b   : > { %v1407_v25 = vperm.slane %v1199_v50, %v2431_v47  ;;  %v1409_v16 = vperm.slane %v1200_v34, %v2434_v48  ;;  %663 = vadd.xlane.f32.xlu2 %v662_v20  ;;  %v1349_v39 = vperm.slane %v1169_v15, %v2766_v55  ;;  %v1351_v7 = vperm.slane %v1170_v6, %v2769_v17 }
 0x19c   : > { %807 = vadd.xlane.f32.xlu0 %v806_v8  ;;  %660 = vadd.xlane.f32.xlu1 %v659_v43  ;;  %v1257_v8 = vunpack.c.l.b16 %v2737_v9  ;;  %v1258_v20 = vunpack.c.h.b16 %v2737_v9  ;;  %v567_v43 = vsel %vm415_vm11, %v2165_v49, 0.0  ;;  %vm1316_vm11 = vcmask 786112  }
 0x19d   : > { %v1408_v14 = vsel %vm1296_vm5, %v1407_v25, %v2661_v33  ;;  %v1350_v63 = vsel %vm1304_vm10, %v1349_v39, %v2668_v38  ;;  %v548_v33 = vsel %vm396_vm6, %v2142_v36, 0.0  ;;  %v710_v38 = vsel %vm616_vm3, %v519_v22, 0.0 }
 0x19e   : > { %v2811_v21 = vsel %vm1300_vm7, %v1409_v16, %v1408_v14  ;;  %v874_v62 = vpop.xlane.xlu2 %873  ;;  %v2819_v18 = vsel %vm1308_vm13, %v1351_v7, %v1350_v63  ;;  %v871_v2 = vpop.xlane.xlu1 %870  ;;  %v797_v50 = vsel %vm616_vm3, %v548_v33, 0.0  ;;  %v579_v14 = vsel %vm427_vm12, %v2201_v12, 0.0 }
 0x19f   : > { %v1043_v45 = vpack.c.bf16 %v874_v62, %v871_v2  ;;  %v2834_v25 = vpop.xlane.xlu0 %879  ;;  %v578_v33 = vsel %vm426_vm4, %v2201_v12, 0.0  ;;  %v1520_v24 = vperm.slane %v1257_v8, %v2069_v3  ;;  %v890_v2 = vsel %vm616_vm3, %v579_v14, 0.0 }
 0x1a0   : > { %vm430_vm6 = vcmp.eq.s32.totalorder %v2194_v0, %v2274_v58  ;;  %vm398_vm12 = vcmp.eq.s32.totalorder %v2133_v30, %v2274_v58  ;;  %vm462_vm4 = vcmp.eq.s32.totalorder %v2304_v23, %v2274_v58 }
 0x1a1   : > { %v1229_v34 = vunpack.c.l.b16 %v1043_v45  ;;  %v1230_v11 = vunpack.c.h.b16 %v1043_v45  ;;  %v582_v8 = vsel %vm430_vm6, %v2201_v12, 0.0  ;;  %vm443_vm6 = vcmp.eq.s32.totalorder %v2244_v42, %v2380_v28 }
 0x1a3   : > { %798 = vadd.xlane.f32.xlu2 %v797_v50  ;;  %v1465_v57 = vperm.slane %v1229_v34, %v2403_v1  ;;  %v1467_v46 = vperm.slane %v1230_v11, %v2406_v10 }
 0x1a4   : > { %984 = vadd.xlane.f32.xlu0 %v983_v40  ;;  %711 = vadd.xlane.f32.xlu1 %v710_v38 }
 0x1a5   : > { %v1466_v15 = vsel %vm1288_vm1, %v1465_v57, %v2691_v53  ;;  %v1521_v53 = vperm.slane %v1258_v20, %v2385_v32 }
 0x1a6   : > { %v739_v16 = vpop.xlane.xlu2 %738  ;;  %v2844_v39 = vsel %vm1292_vm2, %v1467_v46, %v1466_v15  ;;  %v964_v7 = vpop.xlane.xlu1 %963  ;;  %v899_v15 = vsel %vm616_vm3, %v582_v8, 0.0 }
 0x1a7   : > { %v1021_v6 = vpack.c.bf16 %v2716_v27, %v739_v16  ;;  %v1058_v63 = vpack.c.bf16 %v964_v7, %v2693_v13  ;;  %v854_v27 = vsel %vm616_vm3, %v567_v43, 0.0  ;;  %v887_v13 = vsel %vm616_vm3, %v578_v33, 0.0  ;;  %v2869_v20 = vpop.xlane.xlu0 %744 }
 0x1a8   : > { %v1522_v40 = vsel %vm1276_vm14, %v1521_v53, %v1520_v24  ;;  %v609_v16 = vsel %vm457_vm8, %v2309_v26, 0.0  ;;  %vm461_vm14 = vcmp.eq.s32.totalorder %v2304_v23, %v2236_v35  ;;  %vm429_vm8 = vcmp.eq.s32.totalorder %v2194_v0, %v2236_v35 }
 0x1a9   : > { %v1185_v9 = vunpack.c.l.b16 %v1021_v6  ;;  %v1186_v62 = vunpack.c.h.b16 %v1021_v6  ;;  %v1259_v22 = vunpack.c.l.b16 %v1058_v63  ;;  %v1260_v50 = vunpack.c.h.b16 %v1058_v63  ;;  %v3299_v6 = vld [vmem:[#allocation5_spill] sm:$0xff] }
 0x1aa   : > { %v755_v43 = vsel %vm616_vm3, %v3299_v6, 0.0  ;;  %v980_v7 = vsel %vm616_vm3, %v609_v16, 0.0  ;;  %v613_v33 = vsel %vm461_vm14, %v2309_v26, 0.0  ;;  %vm428_vm14 = vcmp.eq.s32.totalorder %v2194_v0, %v2242_v41 }
 0x1ab   : > { %v1380_v59 = vperm.slane %v1185_v9, %v2766_v55  ;;  %v1382_v45 = vperm.slane %v1186_v62, %v2769_v17  ;;  %891 = vadd.xlane.f32.xlu2 %v890_v2  ;;  %v1523_v34 = vperm.slane %v1259_v22, %v2396_v52  ;;  %v1525_v11 = vperm.slane %v1260_v50, %v2075_v4 }
 0x1ac   : > { %855 = vadd.xlane.f32.xlu0 %v854_v27  ;;  %888 = vadd.xlane.f32.xlu1 %v887_v13  ;;  %v2892_v27 = vadd.s32 4294967216, %v2069_v3  ;;  %v2895_v2 = vadd.s32 4294967208, %v2069_v3 }
 0x1ad   : > { %v1381_v32 = vsel %vm1304_vm10, %v1380_v59, %v2712_v29  ;;  %v1524_v46 = vsel %vm1280_vm15, %v1523_v34, %v1522_v40  ;;  %vm413_vm15 = vcmp.eq.s32.totalorder %v2158_v44, %v2236_v35 }
 0x1ae   : > { %v2863_v38 = vsel %vm1308_vm13, %v1382_v45, %v1381_v32  ;;  %v832_v57 = vpop.xlane.xlu2 %831  ;;  %v2872_v52 = vsel %vm1284_vm0, %v1525_v11, %v1524_v46  ;;  %v829_v4 = vpop.xlane.xlu1 %828  ;;  %v565_v24 = vsel %vm413_vm15, %v2165_v49, 0.0  ;;  %vm412_vm0 = vcmp.eq.s32.totalorder %v2158_v44, %v2242_v41 }
 0x1af   : > { %v1036_v29 = vpack.c.bf16 %v832_v57, %v829_v4  ;;  %v564_v34 = vsel %vm412_vm0, %v2165_v49, 0.0  ;;  %v2903_v11 = vpop.xlane.xlu0 %837  ;;  %v848_v40 = vsel %vm616_vm3, %v565_v24, 0.0  ;;  %vm414_vm15 = vcmp.eq.s32.totalorder %v2158_v44, %v2274_v58 }
 0x1b0   : > { %vm459_vm0 = vcmp.eq.s32.totalorder %v2304_v23, %v2380_v28 }
 0x1b1   : > { %v1215_v14 = vunpack.c.l.b16 %v1036_v29  ;;  %v1216_v19 = vunpack.c.h.b16 %v1036_v29 }
 0x1b3   : > { %756 = vadd.xlane.f32.xlu2 %v755_v43  ;;  %v1438_v9 = vperm.slane %v1215_v14, %v2431_v47  ;;  %v1440_v62 = vperm.slane %v1216_v19, %v2434_v48  ;;  %v614_v19 = vsel %vm462_vm4, %v2309_v26, 0.0  ;;  %vm444_vm4 = vcmp.eq.s32.totalorder %v2244_v42, %v2242_v41 }
 0x1b4   : > { %900 = vadd.xlane.f32.xlu0 %v899_v15  ;;  %981 = vadd.xlane.f32.xlu1 %v980_v7  ;;  %v995_v24 = vsel %vm616_vm3, %v614_v19, 0.0  ;;  %v566_v19 = vsel %vm414_vm15, %v2165_v49, 0.0  ;;  %vm1324_vm15 = vcmask 917312  }
 0x1b5   : > { %v1439_v53 = vsel %vm1296_vm5, %v1438_v9, %v2734_v5  ;;  %v992_v5 = vsel %vm616_vm3, %v613_v33, 0.0  ;;  %v595_v9 = vsel %vm443_vm6, %v2259_v51, 0.0  ;;  %vm447_vm6 = vcmp.eq.s32.totalorder %v2244_v42, %v2724_v54 }
 0x1b6   : > { %v649_v63 = vpop.xlane.xlu2 %648  ;;  %v2899_v45 = vsel %vm1300_vm7, %v1440_v62, %v1439_v53  ;;  %v922_v22 = vpop.xlane.xlu1 %921 }
 0x1b7   : > { %v1006_v59 = vpack.c.bf16 %v2772_v31, %v649_v63  ;;  %v1051_v32 = vpack.c.bf16 %v922_v22, %v2739_v61  ;;  %v845_v61 = vsel %vm616_vm3, %v564_v34, 0.0  ;;  %v2933_v53 = vpop.xlane.xlu0 %654 }
 0x1b9   : > { %v1155_v50 = vunpack.c.l.b16 %v1006_v59  ;;  %v1156_v13 = vunpack.c.h.b16 %v1006_v59  ;;  %v1245_v46 = vunpack.c.l.b16 %v1051_v32  ;;  %v1246_v8 = vunpack.c.h.b16 %v1051_v32 }
 0x1ba   : > { %v581_v32 = vsel %vm429_vm8, %v2201_v12, 0.0  ;;  %vm446_vm8 = vcmp.eq.s32.totalorder %v2244_v42, %v2274_v58 }
 0x1bb   : > { %v1311_v31 = vperm.slane %v1155_v50, %v2892_v27  ;;  %v1315_v57 = vperm.slane %v1156_v13, %v2895_v2  ;;  %849 = vadd.xlane.f32.xlu2 %v848_v40  ;;  %v1496_v29 = vperm.slane %v1245_v46, %v2403_v1  ;;  %v1498_v16 = vperm.slane %v1246_v8, %v2406_v10 }
 0x1bc   : > { %993 = vadd.xlane.f32.xlu0 %v992_v5  ;;  %846 = vadd.xlane.f32.xlu1 %v845_v61  ;;  %v580_v46 = vsel %vm428_vm14, %v2201_v12, 0.0  ;;  %v896_v8 = vsel %vm616_vm3, %v581_v32, 0.0  ;;  %vm1320_vm14 = vcmask 851712  }
 0x1bd   : > { %v1313_v4 = vsel %vm1312_vm9, %v1311_v31, %v2791_v56  ;;  %v1497_v30 = vsel %vm1288_vm1, %v1496_v29, %v2762_v37  ;;  %v550_v56 = vsel %vm398_vm12, %v2142_v36, 0.0  ;;  %v938_v36 = vsel %vm616_vm3, %v595_v9, 0.0 }
 0x1be   : > { %v2919_v15 = vsel %vm1316_vm11, %v1315_v57, %v1313_v4  ;;  %v700_v6 = vpop.xlane.xlu2 %699  ;;  %v2927_v43 = vsel %vm1292_vm2, %v1498_v16, %v1497_v30  ;;  %v697_v14 = vpop.xlane.xlu1 %696  ;;  %v803_v62 = vsel %vm616_vm3, %v550_v56, 0.0  ;;  %v893_v29 = vsel %vm616_vm3, %v580_v46, 0.0 }
 0x1bf   : > { %v1014_v7 = vpack.c.bf16 %v700_v6, %v697_v14  ;;  %v2961_v30 = vpop.xlane.xlu0 %705  ;;  %vm445_vm12 = vcmp.eq.s32.totalorder %v2244_v42, %v2236_v35  ;;  %v598_v42 = vsel %vm446_vm8, %v2259_v51, 0.0 }
 0x1c1   : > { %v1171_v63 = vunpack.c.l.b16 %v1014_v7  ;;  %v1172_v33 = vunpack.c.h.b16 %v1014_v7 }
 0x1c3   : > { %804 = vadd.xlane.f32.xlu2 %v803_v62  ;;  %v1353_v37 = vperm.slane %v1171_v63, %v2892_v27  ;;  %v1355_v59 = vperm.slane %v1172_v33, %v2895_v2  ;;  %v611_v62 = vsel %vm459_vm0, %v2309_v26, 0.0  ;;  %v851_v63 = vsel %vm616_vm3, %v566_v19, 0.0 }
 0x1c4   : > { %996 = vadd.xlane.f32.xlu0 %v995_v24  ;;  %939 = vadd.xlane.f32.xlu1 %v938_v36  ;;  %v986_v36 = vsel %vm616_vm3, %v611_v62, 0.0  ;;  %v599_v62 = vsel %vm447_vm6, %v2259_v51, 0.0  ;;  %vm463_vm0 = vcmp.eq.s32.totalorder %v2304_v23, %v2724_v54 }
 0x1c5   : > { %v1354_v50 = vsel %vm1312_vm9, %v1353_v37, %v2819_v18  ;;  %v950_v58 = vsel %vm616_vm3, %v599_v62, 0.0 }
 0x1c6   : > { %v877_v22 = vpop.xlane.xlu2 %876  ;;  %v2947_v34 = vsel %vm1316_vm11, %v1355_v59, %v1354_v50  ;;  %v790_v5 = vpop.xlane.xlu1 %789 }
 0x1c7   : > { %v1044_v13 = vpack.c.bf16 %v2834_v25, %v877_v22  ;;  %v1029_v57 = vpack.c.bf16 %v790_v5, %v2799_v60  ;;  %v597_v22 = vsel %vm445_vm12, %v2259_v51, 0.0  ;;  %v2987_v50 = vpop.xlane.xlu0 %882  ;;  %v596_v5 = vsel %vm444_vm4, %v2259_v51, 0.0 }
 0x1c8   : > { %v941_v46 = vsel %vm616_vm3, %v596_v5, 0.0  ;;  %vm1553_vm12 = vcmask 1042434   ;;  %vm1555_vm4 = vcmask 1043459  }
 0x1c9   : > { %v1231_v40 = vunpack.c.l.b16 %v1044_v13  ;;  %v1232_v31 = vunpack.c.h.b16 %v1044_v13  ;;  %v1201_v4 = vunpack.c.l.b16 %v1029_v57  ;;  %v1202_v25 = vunpack.c.h.b16 %v1029_v57 }
 0x1cb   : > { %v1469_v61 = vperm.slane %v1231_v40, %v2431_v47  ;;  %v1471_v18 = vperm.slane %v1232_v31, %v2434_v48  ;;  %897 = vadd.xlane.f32.xlu2 %v896_v8  ;;  %v1411_v60 = vperm.slane %v1201_v4, %v2766_v55  ;;  %v1413_v6 = vperm.slane %v1202_v25, %v2769_v17 }
 0x1cc   : > { %894 = vadd.xlane.f32.xlu1 %v893_v29  ;;  %v944_v40 = vsel %vm616_vm3, %v597_v22, 0.0 }
 0x1cd   : > { %v1470_v16 = vsel %vm1296_vm5, %v1469_v61, %v2844_v39  ;;  %v1412_v44 = vsel %vm1304_vm10, %v1411_v60, %v2811_v21 }
 0x1ce   : > { %v2964_v56 = vsel %vm1300_vm7, %v1471_v18, %v1470_v16  ;;  %v970_v14 = vpop.xlane.xlu2 %969  ;;  %v2972_v39 = vsel %vm1308_vm13, %v1413_v6, %v1412_v44  ;;  %v967_v7 = vpop.xlane.xlu1 %966 }
 0x1cf   : > { %v1059_v9 = vpack.c.bf16 %v970_v14, %v967_v7  ;;  %v976_v6 = vpop.xlane.xlu0 %975 }
 0x1d1   : > { %v1261_v33 = vunpack.c.l.b16 %v1059_v9  ;;  %v1262_v24 = vunpack.c.h.b16 %v1059_v9 }
 0x1d3   : > { %852 = vadd.xlane.f32.xlu2 %v851_v63  ;;  %v1527_v28 = vperm.slane %v1261_v33, %v2403_v1  ;;  %v1529_v49 = vperm.slane %v1262_v24, %v2406_v10  ;;  %v3028_v63 = vadd.s32 4294967200, %v2069_v3  ;;  %v3031_v33 = vadd.s32 4294967192, %v2069_v3 }
 0x1d4   : > { %987 = vadd.xlane.f32.xlu1 %v986_v36 }
 0x1d5   : > { %v1528_v37 = vsel %vm1288_vm1, %v1527_v28, %v2872_v52  ;;  %vm460_vm1 = vcmp.eq.s32.totalorder %v2304_v23, %v2242_v41 }
 0x1d6   : > { %v835_v21 = vpop.xlane.xlu2 %834  ;;  %v2990_v35 = vsel %vm1292_vm2, %v1529_v49, %v1528_v37  ;;  %v748_v1 = vpop.xlane.xlu1 %747  ;;  %vm431_vm2 = vcmp.eq.s32.totalorder %v2194_v0, %v2724_v54  ;;  %v612_v41 = vsel %vm460_vm1, %v2309_v26, 0.0  ;;  %vm1557_vm1 = vcmask 1044484  }
 0x1d7   : > { %v1037_v59 = vpack.c.bf16 %v2903_v11, %v835_v21  ;;  %v1022_v32 = vpack.c.bf16 %v748_v1, %v2869_v20  ;;  %v583_v60 = vsel %vm431_vm2, %v2201_v12, 0.0  ;;  %v989_v14 = vsel %vm616_vm3, %v612_v41, 0.0  ;;  %v841_v1 = vpop.xlane.xlu0 %840 }
 0x1d8   : > { %v902_v0 = vsel %vm616_vm3, %v583_v60, 0.0  ;;  %v1906_v60 = vld [vmem:[%s2066_s17] sm:$0xff]  ;;  %vm1559_vm2 = vcmask 1045509  }
 0x1d9   : > { %v1217_v13 = vunpack.c.l.b16 %v1037_v59  ;;  %v1218_v10 = vunpack.c.h.b16 %v1037_v59  ;;  %v1187_v31 = vunpack.c.l.b16 %v1022_v32  ;;  %v1188_v57 = vunpack.c.h.b16 %v1022_v32 }
 0x1db   : > { %v1442_v52 = vperm.slane %v1217_v13, %v2766_v55  ;;  %v1444_v11 = vperm.slane %v1218_v10, %v2769_v17  ;;  %945 = vadd.xlane.f32.xlu2 %v944_v40  ;;  %v1384_v20 = vperm.slane %v1187_v31, %v2892_v27  ;;  %v1386_v61 = vperm.slane %v1188_v57, %v2895_v2 }
 0x1dc   : > { %942 = vadd.xlane.f32.xlu1 %v941_v46  ;;  %v947_v13 = vsel %vm616_vm3, %v598_v42, 0.0  ;;  %v615_v31 = vsel %vm463_vm0, %v2309_v26, 0.0 }
 0x1dd   : > { %v1443_v8 = vsel %vm1304_vm10, %v1442_v52, %v2899_v45  ;;  %v1385_v25 = vsel %vm1312_vm9, %v1384_v20, %v2863_v38 }
 0x1de   : > { %v3005_v18 = vsel %vm1308_vm13, %v1444_v11, %v1443_v8  ;;  %v928_v4 = vpop.xlane.xlu2 %927  ;;  %v3013_v29 = vsel %vm1316_vm11, %v1386_v61, %v1385_v25  ;;  %v998_v8 = vsel %vm616_vm3, %v615_v31, 0.0  ;;  %vm1328_vm3 = vcmask 982912  }
 0x1df   : > { %v925_v45 = vpop.xlane.xlu1 %924  ;;  %v934_v23 = vpop.xlane.xlu0 %933 }
 0x1e0   : > { %v1052_v16 = vpack.c.bf16 %v928_v4, %v925_v45 }
 0x1e2   : > { %v1247_v44 = vunpack.c.l.b16 %v1052_v16  ;;  %v1248_v19 = vunpack.c.h.b16 %v1052_v16 }
 0x1e3   : > { %990 = vadd.xlane.f32.xlu2 %v989_v14  ;;  %v1628_v14 = vcvt.s32.f32 %v1906_v60 }
 0x1e4   : > { %v1500_v38 = vperm.slane %v1247_v44, %v2431_v47  ;;  %v1502_v7 = vperm.slane %v1248_v19, %v2434_v48  ;;  %903 = vadd.xlane.f32.xlu1 %v902_v0 }
 0x1e6   : > { %v703_v9 = vpop.xlane.xlu2 %702  ;;  %v1501_v12 = vsel %vm1296_vm5, %v1500_v38, %v2927_v43 }
 0x1e7   : > { %v1015_v24 = vpack.c.bf16 %v2961_v30, %v703_v9  ;;  %v3035_v36 = vsel %vm1300_vm7, %v1502_v7, %v1501_v12  ;;  %v658_v28 = vpop.xlane.xlu1 %657 }
 0x1e8   : > { %v1007_v37 = vpack.c.bf16 %v658_v28, %v2933_v53 }
 0x1e9   : > { %v1173_v49 = vunpack.c.l.b16 %v1015_v24  ;;  %v1174_v21 = vunpack.c.h.b16 %v1015_v24 }
 0x1ea   : > { %v1157_v22 = vunpack.c.l.b16 %v1007_v37  ;;  %v1158_v30 = vunpack.c.h.b16 %v1007_v37 }
 0x1eb   : > { %v1357_v43 = vperm.slane %v1173_v49, %v3028_v63  ;;  %v1359_v59 = vperm.slane %v1174_v21, %v3031_v33  ;;  %951 = vadd.xlane.f32.xlu2 %v950_v58 }
 0x1ec   : > { %v1319_v53 = vperm.slane %v1157_v22, %v3028_v63  ;;  %v1323_v51 = vperm.slane %v1158_v30, %v3031_v33  ;;  %948 = vadd.xlane.f32.xlu1 %v947_v13 }
 0x1ed   : > { %v1358_v10 = vsel %vm1320_vm14, %v1357_v43, %v2947_v34 }
 0x1ee   : > { %v3048_v32 = vsel %vm1324_vm15, %v1359_v59, %v1358_v10  ;;  %v796_v5 = vpop.xlane.xlu2 %795  ;;  %v1321_v40 = vsel %vm1320_vm14, %v1319_v53, %v2919_v15 }
 0x1ef   : > { %v3055_v52 = vsel %vm1324_vm15, %v1323_v51, %v1321_v40  ;;  %v793_v11 = vpop.xlane.xlu1 %792 }
 0x1f0   : > { %v1030_v34 = vpack.c.bf16 %v796_v5, %v793_v11 }
 0x1f2   : > { %v1203_v57 = vunpack.c.l.b16 %v1030_v34  ;;  %v1204_v46 = vunpack.c.h.b16 %v1030_v34 }
 0x1f4   : > { %v1415_v20 = vperm.slane %v1203_v57, %v2892_v27  ;;  %v1417_v61 = vperm.slane %v1204_v46, %v2895_v2  ;;  %999 = vadd.xlane.f32.xlu1 %v998_v8 }
 0x1f6   : > { %v973_v54 = vpop.xlane.xlu2 %972  ;;  %v1416_v15 = vsel %vm1312_vm9, %v1415_v20, %v2972_v39  ;;  %v3104_v20 = vadd.s32 4294967184, %v2069_v3 }
 0x1f7   : > { %v1060_v4 = vpack.c.bf16 %v976_v6, %v973_v54  ;;  %v3064_v25 = vsel %vm1316_vm11, %v1417_v61, %v1416_v15  ;;  %v886_v26 = vpop.xlane.xlu1 %885 }
 0x1f8   : > { %v1045_v16 = vpack.c.bf16 %v886_v26, %v2987_v50  ;;  %v1629_v50 = vmax.f32 %v1628_v14, 1.0 }
 0x1f9   : > { %v1263_v41 = vunpack.c.l.b16 %v1060_v4  ;;  %v1264_v45 = vunpack.c.h.b16 %v1060_v4 }
 0x1fa   : > { %v1233_v0 = vunpack.c.l.b16 %v1045_v16  ;;  %v1234_v38 = vunpack.c.h.b16 %v1045_v16 }
 0x1fb   : > { %v1531_v44 = vperm.slane %v1263_v41, %v2431_v47  ;;  %v1533_v19 = vperm.slane %v1264_v45, %v2434_v48  ;;  %v709_v47 = vpop.xlane.xlu0 %708 }
 0x1fc   : > { %v1473_v6 = vperm.slane %v1233_v0, %v2766_v55  ;;  %v1475_v7 = vperm.slane %v1234_v38, %v2769_v17 }
 0x1fd   : > { %v1532_v39 = vsel %vm1296_vm5, %v1531_v44, %v2990_v35  ;;  %vm1332_vm5 = vcmask 1048512  }
 0x1fe   : > { %v3075_v9 = vsel %vm1300_vm7, %v1533_v19, %v1532_v39  ;;  %v754_v62 = vpop.xlane.xlu2 %753  ;;  %v1474_v12 = vsel %vm1304_vm10, %v1473_v6, %v2964_v56  ;;  %vm1551_vm7 = vcmask 1041409  }
 0x1ff   : > { %v3080_v48 = vsel %vm1308_vm13, %v1475_v7, %v1474_v12  ;;  %v751_v24 = vpop.xlane.xlu1 %750 }
 0x200   : > { %v1023_v28 = vpack.c.bf16 %v754_v62, %v751_v24 }
 0x202   : > { %v1189_v49 = vunpack.c.l.b16 %v1023_v28  ;;  %v1190_v35 = vunpack.c.h.b16 %v1023_v28 }
 0x203   : > { %1632 = vperm.xlu2 %1899, %v1629_v50   ;;  %v802_v10 = vpop.xlane.xlu0 %801 }
 0x204   : > { %v1388_v21 = vperm.slane %v1189_v49, %v3028_v63  ;;  %v1390_v37 = vperm.slane %v1190_v35, %v3031_v33 }
 0x206   : > { %v931_v42 = vpop.xlane.xlu2 %930  ;;  %v1389_v58 = vsel %vm1320_vm14, %v1388_v21, %v3013_v29 }
 0x207   : > { %v1053_v43 = vpack.c.bf16 %v934_v23, %v931_v42  ;;  %v3087_v56 = vsel %vm1324_vm15, %v1390_v37, %v1389_v58  ;;  %v844_v59 = vpop.xlane.xlu1 %843 }
 0x208   : > { %v1038_v13 = vpack.c.bf16 %v844_v59, %v841_v1 }
 0x209   : > { %v1249_v22 = vunpack.c.l.b16 %v1053_v43  ;;  %v1250_v30 = vunpack.c.h.b16 %v1053_v43 }
 0x20a   : > { %v1219_v5 = vunpack.c.l.b16 %v1038_v13  ;;  %v1220_v40 = vunpack.c.h.b16 %v1038_v13 }
 0x20b   : > { %v1504_v53 = vperm.slane %v1249_v22, %v2766_v55  ;;  %v1506_v51 = vperm.slane %v1250_v30, %v2769_v17  ;;  %v3109_v15 = vpop.xlane.xlu0 %978 }
 0x20c   : > { %v1446_v29 = vperm.slane %v1219_v5, %v2892_v27  ;;  %v1448_v34 = vperm.slane %v1220_v40, %v2895_v2 }
 0x20d   : > { %v1505_v11 = vsel %vm1304_vm10, %v1504_v53, %v3035_v36  ;;  %v3107_v36 = vadd.s32 4294967176, %v2069_v3 }
 0x20e   : > { %v3096_v31 = vsel %vm1308_vm13, %v1506_v51, %v1505_v11  ;;  %v664_v57 = vpop.xlane.xlu2 %663  ;;  %v1447_v1 = vsel %vm1312_vm9, %v1446_v29, %v3005_v18 }
 0x20f   : > { %v3101_v46 = vsel %vm1316_vm11, %v1448_v34, %v1447_v1  ;;  %v661_v8 = vpop.xlane.xlu1 %660 }
 0x210   : > { %v1008_v61 = vpack.c.bf16 %v664_v57, %v661_v8  ;;  %v1856_v8 = vld [vmem:[%s3290_s2 + $0x38] sm:$0xff] }
 0x211   : > { %1615 = vmatpush.bf16.msra.mxu0 %v1856_v8 }
 0x212   : > { %v1159_v23 = vunpack.c.l.b16 %v1008_v61  ;;  %v1160_v54 = vunpack.c.h.b16 %v1008_v61 }
 0x213   : > { %v760_v62 = vpop.xlane.xlu0 %759 }
 0x214   : > { %v1327_v4 = vperm.slane %v1159_v23, %v3104_v20  ;;  %v1331_v18 = vperm.slane %v1160_v54, %v3107_v36 }
 0x216   : > { %v799_v26 = vpop.xlane.xlu2 %798  ;;  %v1329_v41 = vsel %vm1328_vm3, %v1327_v4, %v3055_v52 }
 0x217   : > { %v1031_v45 = vpack.c.bf16 %v802_v10, %v799_v26  ;;  %v1333_v16 = vsel %vm1332_vm5, %v1331_v18, %v1329_v41  ;;  %v712_v3 = vpop.xlane.xlu1 %711  ;;  %v1854_v41 = vld [vmem:[%s3290_s2 + $0x28] sm:$0xff] }
 0x218   : > { %v1016_v44 = vpack.c.bf16 %v712_v3, %v709_v47 }
 0x219   : > { %v1205_v60 = vunpack.c.l.b16 %v1031_v45  ;;  %v1206_v14 = vunpack.c.h.b16 %v1031_v45 }
 0x21a   : > { %v1175_v38 = vunpack.c.l.b16 %v1016_v44  ;;  %v1176_v39 = vunpack.c.h.b16 %v1016_v44 }
 0x21b   : > { %v1419_v19 = vperm.slane %v1205_v60, %v3028_v63  ;;  %v1421_v0 = vperm.slane %v1206_v14, %v3031_v33  ;;  %v3130_v22 = vpop.xlane.xlu0 %936  ;;  %v1853_v60 = vld [vmem:[%s3290_s2 + $0x20] sm:$0xff] }
 0x21c   : > { %v1361_v7 = vperm.slane %v1175_v38, %v3104_v20  ;;  %v1363_v52 = vperm.slane %v1176_v39, %v3107_v36 }
 0x21d   : > { %v1420_v6 = vsel %vm1320_vm14, %v1419_v19, %v3064_v25 }
 0x21e   : > { %v1422_v50 = vsel %vm1324_vm15, %v1421_v0, %v1420_v6  ;;  %v892_v12 = vpop.xlane.xlu2 %891  ;;  %v1362_v47 = vsel %vm1328_vm3, %v1361_v7, %v3048_v32 }
 0x21f   : > { %v1364_v24 = vsel %vm1332_vm5, %v1363_v52, %v1362_v47  ;;  %v889_v28 = vpop.xlane.xlu1 %888 }
 0x220   : > { %v1552_v49 = vsel %vm1551_vm7, %v1364_v24, %v1333_v16  ;;  %v1046_v35 = vpack.c.bf16 %v892_v12, %v889_v28  ;;  %v1852_v12 = vld [vmem:[%s3290_s2 + $0x18] sm:$0xff] }
 0x222   : > { %v1235_v21 = vunpack.c.l.b16 %v1046_v35  ;;  %v1236_v37 = vunpack.c.h.b16 %v1046_v35 }
 0x223   : > { %v808_v34 = vpop.xlane.xlu0 %807 }
 0x224   : > { %v1477_v25 = vperm.slane %v1235_v21, %v2892_v27  ;;  %v1479_v42 = vperm.slane %v1236_v37, %v2895_v2 }
 0x226   : > { %v757_v58 = vpop.xlane.xlu2 %756  ;;  %v1478_v43 = vsel %vm1312_vm9, %v1477_v25, %v3080_v48 }
 0x227   : > { %v1024_v59 = vpack.c.bf16 %v760_v62, %v757_v58  ;;  %v3133_v32 = vsel %vm1316_vm11, %v1479_v42, %v1478_v43  ;;  %v3135_v30 = vpop.xlane.xlu1 %981  ;;  %v1850_v43 = vld [vmem:[%s3290_s2 + $0x8] sm:$0xff] }
 0x229   : > { %v1191_v13 = vunpack.c.l.b16 %v1024_v59  ;;  %v1192_v10 = vunpack.c.h.b16 %v1024_v59 }
 0x22b   : > { %v1392_v53 = vperm.slane %v1191_v13, %v3104_v20  ;;  %v1394_v51 = vperm.slane %v1192_v10, %v3107_v36  ;;  %v3145_v61 = vpop.xlane.xlu0 %984 }
 0x22d   : > { %v1393_v5 = vsel %vm1328_vm3, %v1392_v53, %v3087_v56  ;;  %v1855_v56 = vld [vmem:[%s3290_s2 + $0x30] sm:$0xff] }
 0x22e   : > { %v1395_v48 = vsel %vm1332_vm5, %v1394_v51, %v1393_v5  ;;  %v850_v40 = vpop.xlane.xlu2 %849  ;;  %1616 = vmatpush.bf16.msra.mxu0 %v1855_v56  ;;  %v1653_v5 = vld [vmem:[%s3291_s3 + $0x18] sm:$0xff] }
 0x22f   : > { %v1554_v11 = vsel %vm1553_vm12, %v1395_v48, %v1552_v49  ;;  %v847_v29 = vpop.xlane.xlu1 %846  ;;  %v1652_v48 = vld [vmem:[%s3291_s3 + $0x10] sm:$0xff]  ;;  %1674 = vmatpush.msra.mxu1 %v1653_v5 }
 0x230   : > { %v1039_v23 = vpack.c.bf16 %v850_v40, %v847_v29  ;;  %v1061_v40 = vpack.c.bf16 %v3135_v30, %v3109_v15 }
 0x231   : > { %1675 = vmatpush.msra.mxu1 %v1652_v48 }
 0x232   : > { %v1221_v26 = vunpack.c.l.b16 %v1039_v23  ;;  %v1222_v16 = vunpack.c.h.b16 %v1039_v23  ;;  %1617 = vmatpush.bf16.msra.mxu0 %v1854_v41  ;;  %v1265_v23 = vunpack.c.l.b16 %v1061_v40 }
 0x233   : > { %v856_v14 = vpop.xlane.xlu0 %855 }
 0x234   : > { %v1450_v3 = vperm.slane %v1221_v26, %v3028_v63  ;;  %v1452_v39 = vperm.slane %v1222_v16, %v3031_v33  ;;  %v1266_v16 = vunpack.c.h.b16 %v1061_v40 }
 0x236   : > { %v805_v57 = vpop.xlane.xlu2 %804  ;;  %v1451_v7 = vsel %vm1320_vm14, %v1450_v3, %v3101_v46  ;;  %1618 = vmatpush.bf16.msra.mxu0 %v1853_v60  ;;  %v1851_v46 = vld [vmem:[%s3290_s2 + $0x10] sm:$0xff]  ;;  %v1535_v3 = vperm.slane %v1265_v23, %v2766_v55 }
 0x237   : > { %v940_v1 = vpop.xlane.xlu1 %939  ;;  %v1032_v4 = vpack.c.bf16 %v808_v34, %v805_v57  ;;  %v1453_v35 = vsel %vm1324_vm15, %v1452_v39, %v1451_v7 }
 0x238   : > { %v1054_v13 = vpack.c.bf16 %v940_v1, %v3130_v22 }
 0x239   : > { %v1207_v45 = vunpack.c.l.b16 %v1032_v4  ;;  %v1208_v44 = vunpack.c.h.b16 %v1032_v4 }
 0x23a   : > { %1619 = vmatpush.bf16.msra.mxu0 %v1852_v12  ;;  %v1251_v22 = vunpack.c.l.b16 %v1054_v13  ;;  %v1536_v12 = vsel %vm1304_vm10, %v1535_v3, %v3075_v9  ;;  %vm1561_vm10 = vcmask 1046534  }
 0x23b   : > { %v1423_v0 = vperm.slane %v1207_v45, %v3104_v20  ;;  %v1425_v47 = vperm.slane %v1208_v44, %v3107_v36  ;;  %v901_v51 = vpop.xlane.xlu0 %900 }
 0x23c   : > { %v1508_v15 = vperm.slane %v1251_v22, %v2892_v27 }
 0x23d   : > { %v1424_v24 = vsel %vm1328_vm3, %v1423_v0, %v1422_v50 }
 0x23e   : > { %v898_v54 = vpop.xlane.xlu2 %897  ;;  %v1426_v37 = vsel %vm1332_vm5, %v1425_v47, %v1424_v24  ;;  %1620 = vmatpush.bf16.msra.mxu0 %v1851_v46  ;;  %v1537_v47 = vperm.slane %v1266_v16, %v2769_v17 }
 0x23f   : > { %v895_v18 = vpop.xlane.xlu1 %894  ;;  %v1556_v59 = vsel %vm1555_vm4, %v1426_v37, %v1554_v11  ;;  %v1849_v11 = vld [vmem:[%s3290_s2] sm:$0xff] }
 0x240   : > { %v1047_v42 = vpack.c.bf16 %v898_v54, %v895_v18  ;;  %v1252_v54 = vunpack.c.h.b16 %v1054_v13 }
 0x242   : > { %v1237_v53 = vunpack.c.l.b16 %v1047_v42  ;;  %1621 = vmatpush.bf16.msra.mxu0 %v1850_v43  ;;  %v1238_v29 = vunpack.c.h.b16 %v1047_v42  ;;  %v1510_v60 = vperm.slane %v1252_v54, %v2895_v2 }
 0x244   : > { %v1481_v57 = vperm.slane %v1237_v53, %v3028_v63  ;;  %v1483_v30 = vperm.slane %v1238_v29, %v3031_v33 }
 0x246   : > { %v853_v19 = vpop.xlane.xlu2 %852  ;;  %1622 = vmatpush.bf16.msra.mxu0 %v1849_v11  ;;  %v1482_v18 = vsel %vm1320_vm14, %v1481_v57, %v3133_v32  ;;  %v1509_v32 = vsel %vm1312_vm9, %v1508_v15, %v3096_v31 }
 0x247   : > { %v1040_v38 = vpack.c.bf16 %v856_v14, %v853_v19  ;;  %v988_v6 = vpop.xlane.xlu1 %987  ;;  %v994_v19 = vpop.xlane.xlu0 %993  ;;  %v1484_v0 = vsel %vm1324_vm15, %v1483_v30, %v1482_v18 }
 0x248   : > { %v1062_v56 = vpack.c.bf16 %v988_v6, %v3145_v61 }
 0x249   : > { %v1223_v52 = vunpack.c.l.b16 %v1040_v38  ;;  %v1224_v62 = vunpack.c.h.b16 %v1040_v38 }
 0x24a   : > { %v1267_v38 = vunpack.c.l.b16 %v1062_v56 }
 0x24b   : > { %v1454_v28 = vperm.slane %v1223_v52, %v3104_v20  ;;  %v1456_v49 = vperm.slane %v1224_v62, %v3107_v36 }
 0x24c   : > { %v1539_v31 = vperm.slane %v1267_v38, %v2892_v27  ;;  %v1685_v38 = vld [vmem:[%s3293_s5 + $0x10] sm:$0xff] }
 0x24d   : > { %v1455_v21 = vsel %vm1328_vm3, %v1454_v28, %v1453_v35  ;;  %v1268_v35 = vunpack.c.h.b16 %v1062_v56 }
 0x24e   : > { %v946_v25 = vpop.xlane.xlu2 %945  ;;  %v1457_v58 = vsel %vm1332_vm5, %v1456_v49, %v1455_v21  ;;  %v1511_v49 = vsel %vm1316_vm11, %v1510_v60, %v1509_v32  ;;  %v1900_v32 = vld [vmem:[%s3292_s4] ss:$0 sm:$0xff] }
 0x24f   : > { %v943_v50 = vpop.xlane.xlu1 %942  ;;  %v1558_v10 = vsel %vm1557_vm1, %v1457_v58, %v1556_v59  ;;  %v1538_v58 = vsel %vm1308_vm13, %v1537_v47, %v1536_v12  ;;  %v997_v53 = vpop.xlane.xlu0 %996  ;;  %vm1563_vm13 = vcmask 1047559  }
 0x250   : > { %v1055_v1 = vpack.c.bf16 %v946_v25, %v943_v50  ;;  %v1541_v50 = vperm.slane %v1268_v35, %v2895_v2  ;;  %v1540_v27 = vsel %vm1312_vm9, %v1539_v31, %v1538_v58 }
 0x252   : > { %v1253_v26 = vunpack.c.l.b16 %v1055_v1  ;;  %v1254_v61 = vunpack.c.h.b16 %v1055_v1  ;;  %v1542_v11 = vsel %vm1316_vm11, %v1541_v50, %v1540_v27 }
 0x254   : > { %v1512_v6 = vperm.slane %v1253_v26, %v3028_v63  ;;  %v1514_v21 = vperm.slane %v1254_v61, %v3031_v33  ;;  %v1684_v61 = vld [vmem:[%s3293_s5 + $0x8] sm:$0xff] }
 0x256   : > { %v991_v34 = vpop.xlane.xlu2 %990  ;;  %v1513_v46 = vsel %vm1320_vm14, %v1512_v6, %v1511_v49 }
 0x257   : > { %v904_v8 = vpop.xlane.xlu1 %903  ;;  %v1063_v7 = vpack.c.bf16 %v994_v19, %v991_v34  ;;  %v1515_v43 = vsel %vm1324_vm15, %v1514_v21, %v1513_v46 }
 0x258   : > { %v1048_v4 = vpack.c.bf16 %v904_v8, %v901_v51 }
 0x259   : > { %v1269_v37 = vunpack.c.l.b16 %v1063_v7  ;;  %v1270_v59 = vunpack.c.h.b16 %v1063_v7 }
 0x25a   : > { %v1239_v41 = vunpack.c.l.b16 %v1048_v4  ;;  %v1240_v45 = vunpack.c.h.b16 %v1048_v4 }
 0x25b   : > { %v1543_v13 = vperm.slane %v1269_v37, %v3028_v63  ;;  %v1545_v2 = vperm.slane %v1270_v59, %v3031_v33  ;;  %v1651_v33 = vld [vmem:[%s3291_s3 + $0x8] sm:$0xff] }
 0x25c   : > { %v1485_v14 = vperm.slane %v1239_v41, %v3104_v20  ;;  %v1487_v44 = vperm.slane %v1240_v45, %v3107_v36  ;;  %1676 = vmatpush.msra.mxu1 %v1651_v33 }
 0x25d   : > { %v1544_v22 = vsel %vm1320_vm14, %v1543_v13, %v1542_v11  ;;  %vm1658_vm14 = vcmask 261120  }
 0x25e   : > { %v952_v39 = vpop.xlane.xlu2 %951  ;;  %v1486_v55 = vsel %vm1328_vm3, %v1485_v14, %v1484_v0  ;;  %v1546_v1 = vsel %vm1324_vm15, %v1545_v2, %v1544_v22  ;;  %v1686_v0 = vld [vmem:[%s3293_s5 + $0x18] sm:$0xff] }
 0x25f   : > { %v949_v52 = vpop.xlane.xlu1 %948  ;;  %v1488_v62 = vsel %vm1332_vm5, %v1487_v44, %v1486_v55  ;;  %1706 = vmatpush.msra.mxu2 %v1686_v0 }
 0x260   : > { %v1056_v24 = vpack.c.bf16 %v952_v39, %v949_v52  ;;  %v1560_v28 = vsel %vm1559_vm2, %v1488_v62, %v1558_v10  ;;  %v1683_v39 = vld [vmem:[%s3293_s5] sm:$0xff] }
 0x261   : > { %1707 = vmatpush.msra.mxu2 %v1685_v38  ;;  %v1901_v52 = vld [vmem:[%s3294_s6] ss:$0 sm:$0xff] }
 0x262   : > { %v1255_v25 = vunpack.c.l.b16 %v1056_v24  ;;  %v1256_v42 = vunpack.c.h.b16 %v1056_v24 }
 0x263   : > { %1708 = vmatpush.msra.mxu2 %v1684_v61 }
 0x264   : > { %v1516_v9 = vperm.slane %v1255_v25, %v3104_v20  ;;  %v1518_v17 = vperm.slane %v1256_v42, %v3107_v36 }
 0x265   : > { %1709 = vmatpush.msra.mxu2 %v1683_v39 }
 0x266   : > { %v1517_v10 = vsel %vm1328_vm3, %v1516_v9, %v1515_v43  ;;  %v1633_v15 = vpop.permute.xlu2 %1632 }
 0x267   : > { %v1000_v51 = vpop.xlane.xlu1 %999  ;;  %v1519_v5 = vsel %vm1332_vm5, %v1518_v17, %v1517_v10  ;;  %1902 = vrcp.f32 %v1633_v15  ;;  %vm1640_vm9 = vweird.f32 %v1633_v15  ;;  %v1646_v26 = vand.u32 2147483648, %v1633_v15 }
 0x268   : > { %v1064_v48 = vpack.c.bf16 %v1000_v51, %v997_v53  ;;  %v1562_v40 = vsel %vm1561_vm10, %v1519_v5, %v1560_v28  ;;  %v1644_v45 = vand.u32 2147483647, %v1633_v15 }
 0x269   : > { %v1647_v16 = vor.u32 1.1754944e-38, %v1646_v26 }
 0x26a   : > { %v1271_v29 = vunpack.c.l.b16 %v1064_v48  ;;  %v1272_v34 = vunpack.c.h.b16 %v1064_v48  ;;  %vm1645_vm8 = vcmp.eq.f32.partialorder %v1644_v45, 8.507059e+37 }
 0x26c   : > { %v1547_v57 = vperm.slane %v1271_v29, %v3104_v20  ;;  %v1549_v63 = vperm.slane %v1272_v34, %v3107_v36  ;;  %v1650_v20 = vld [vmem:[%s3291_s3] sm:$0xff] }
 0x26d   : > { %1677 = vmatpush.msra.mxu1 %v1650_v20  ;;  %v1903_v36 = vpop.eup %1902 }
 0x26e   : > { %v1548_v8 = vsel %vm1328_vm3, %v1547_v57, %v1546_v1  ;;  %v1636_v30 = vmul.f32 %v1903_v36, %v1633_v15  ;;  %vm1641_vm11 = vweird.f32 %v1903_v36 }
 0x26f   : > { %v1550_v23 = vsel %vm1332_vm5, %v1549_v63, %v1548_v8  ;;  %vm1642_vm6 = vmor %vm1640_vm9, %vm1641_vm11 }
 0x270   : > { %v1564_v54 = vsel %vm1563_vm13, %v1550_v23, %v1562_v40  ;;  %v1637_v56 = vsub.f32 1.0, %v1636_v30 }
 0x271   : > { %v1565_v4 = vpack.c.b16 %v1564_v54, %v1564_v54 }
 0x272   : > { %v1638_v18 = vmul.f32 %v1903_v36, %v1637_v56 }
 0x273   : > { %1623 = vmatmul.bf16.vlgmr.msra.gmra.mxu0 %v1565_v4 }
 0x274   : > { %v1639_v41 = vadd.f32 %v1903_v36, %v1638_v18 }
 0x276   : > { %v1643_v3 = vsel %vm1642_vm6, %v1903_v36, %v1639_v41 }
 0x277   : > { %v1648_v14 = vsel %vm1645_vm8, %v1647_v16, %v1643_v3 }
 0x2f0   : > { %v1624_v60 = vpop.f32.mrf.mxu0 }
 0x2f1   : > { %v1649_v44 = vmul.f32 %v1648_v14, %v1624_v60 }
 0x2f3   : > { %1843 = vmatmul.msk.f32.vlgmr.msra.gmra.mxu1 %vm1658_vm14, %v1649_v44 }
 0x2f8   : > { %v1626_v19 = vpop.f32.mrf.mxu0 }
 0x370   : > { %v1679_v6 = vpop.f32.mrf.mxu1 }
 0x371   : > { %v1680_v7 = vadd.f32 %v1900_v32, %v1679_v6 }
 0x373   : > { %1904 = vtanh.f32 %v1680_v7 }
 0x379   : > { %v1905_v55 = vpop.eup %1904 }
 0x37a   : > { %1844 = vmatmul.msk.f32.vlgmr.msra.gmra.mxu2 %vm1658_vm14, %v1905_v55 }
 0x3fd   : > { %v1711_v62 = vpop.f32.mrf.mxu2 }
 0x3fe   : > { %v1712_v12 = vadd.f32 %v1901_v52, %v1711_v62 }
 0x400   : > { %1714 = vst [vmem:[%s282_s21] sm:$0xff] %v1712_v12 }
 0x401   : > { %1934 = shalt.err (!%p1931_p3)
}
 0x402   : > { %1857 = dma.vmem_to_hbm [thread:$0]  (%p2051_p5), %s1729_s22, 128, %s1731_s23, %s1716_s29  }
 0x403 PF: > { %p1863_p4 = scmp.ge.s32.totalorder %s1969_s27, 2  ;;  %s1742_s13 = sand.u32 1, %s1957_s24  }
 0x404   : > { %s1743_s18 = scalar_lea.sflag [#allocation3], %s1742_s13 }
 0x405   : > { %p1860_p7 = pnand %p1863_p4, %p2055_p6 }
 0x407   : > { %p1861_p8 = pneg %p1860_p7 }
 0x409   : > { %1952 = dma.done.wait (%p1861_p8), %s1743_s18, 128  }
 0x40a   : > { %1954 = vsyncadd (%p1861_p8), %s1743_s18, 4294967168  ;;  %p17_p9 = scmp.ge.s32.totalorder %s2038_s30, 4   ;;  %s3300_s24 = smov %s1961_s25 }
 0x40b   : > { %s3301_s25 = smov %s1965_s26  ;;  %s3302_s26 = smov %s2049_s10 }
 0x40c   : > { %s3303_s27 = smov %s2038_s30  ;;  %19 = sbr.rel (!%p17_p9) target bundleno = 3 (0x3), region = 86 }
 0x411   :  { %1749 = vsyncpa [#allocation3], 1 }
 0x412   :  { %1751 = vsyncpa [#allocation3 + $0x1], 1 }

</bundles_post_ra>
